<compile_context>
chip_gen: v7x
topology: tpu7x:2x2x1
jax: 0.10.0
libtpu: 0.0.40
codegen_flags: <defaults>
</compile_context>

<pallas_src>
import functools

import jax
import jax.numpy as jnp
import numpy as np
from jax import lax
from jax.experimental import pallas as pl
from jax.experimental.pallas import tpu as pltpu

EPS = 1e-5
_VMEM_LIMIT = 32 * 1024 * 1024      # raise scoped VMEM above the 16 MiB v5e default
COMPUTE_DTYPE = jnp.float32         # matmul operand dtype (bf16 -> ~2x HBM/MXU throughput,
                                    #   ~1e-2 relative error; keep f32 for tight allclose)
Z_DTYPE = jnp.float32               # pre-BN intermediates stored to HBM
H_DTYPE = jnp.float32               # post-BN/ReLU activations handed back to the MXU
DEFAULT_TILE_ROWS = 512             # 512-1024 row tiles ~= HBM-roofline sweet spot


def _round_up(x, m):
    return (x + m - 1) // m * m


def _pad_rows(x, rp):
    r = x.shape[0]
    return x if rp == r else jnp.pad(x, ((0, rp - r), (0, 0)))


# ----------------------------------------------------------------------------
# Kernel A: z = x @ w (f32 accumulation) + per-channel sum / sum-of-squares
# accumulated into resident (1, C) outputs across the row grid (pass A of two-pass BN).
# ----------------------------------------------------------------------------
def _matmul_stats_kernel(x_ref, w_ref, z_ref, sum_ref, ssq_ref):
    @pl.when(pl.program_id(0) == 0)
    def _init():
        sum_ref[...] = jnp.zeros_like(sum_ref)
        ssq_ref[...] = jnp.zeros_like(ssq_ref)

    z = jnp.dot(x_ref[...], w_ref[...], preferred_element_type=jnp.float32)
    z_ref[...] = z.astype(z_ref.dtype)
    sum_ref[...] += jnp.sum(z, axis=0, keepdims=True)
    ssq_ref[...] += jnp.sum(z * z, axis=0, keepdims=True)


# ----------------------------------------------------------------------------
# Kernel B: o = relu(z * scale + shift)   (BN mean/var/gamma/beta folded into scale/shift)
# ----------------------------------------------------------------------------
def _scale_shift_relu_kernel(z_ref, sc_ref, sh_ref, o_ref):
    y = z_ref[...].astype(jnp.float32) * sc_ref[...] + sh_ref[...]
    o_ref[...] = jnp.maximum(y, 0.0).astype(o_ref.dtype)


# ----------------------------------------------------------------------------
# Fused kernel: h = relu(z_in * scale + shift);  z = h @ w;  accumulate stats of z.
# (BN+ReLU of the previous stage fused into the next matmul -> h never hits HBM.)
# ----------------------------------------------------------------------------
def _bn_relu_matmul_stats_kernel(n_valid, zin_ref, sc_ref, sh_ref, w_ref,
                                 z_ref, sum_ref, ssq_ref):
    @pl.when(pl.program_id(0) == 0)
    def _init():
        sum_ref[...] = jnp.zeros_like(sum_ref)
        ssq_ref[...] = jnp.zeros_like(ssq_ref)

    h = jnp.maximum(zin_ref[...].astype(jnp.float32) * sc_ref[...] + sh_ref[...], 0.0)
    if n_valid is not None:  # zero padded rows so they don't pollute the BN statistics
        tr = h.shape[0]
        rid = pl.program_id(0) * tr + lax.broadcasted_iota(jnp.int32, (tr, 1), 0)
        h = jnp.where(rid < n_valid, h, 0.0)
    z = jnp.dot(h.astype(w_ref.dtype), w_ref[...], preferred_element_type=jnp.float32)
    z_ref[...] = z.astype(z_ref.dtype)
    sum_ref[...] += jnp.sum(z, axis=0, keepdims=True)
    ssq_ref[...] += jnp.sum(z * z, axis=0, keepdims=True)


# ----------------------------------------------------------------------------
# pallas_call wrappers
# ----------------------------------------------------------------------------
def matmul_stats(x, w, *, tile_rows=DEFAULT_TILE_ROWS, z_dtype=Z_DTYPE):
    R, K = x.shape
    C = w.shape[1]
    tr = min(tile_rows, _round_up(R, 8))
    Rp = _round_up(R, tr)
    x = _pad_rows(x.astype(COMPUTE_DTYPE), Rp)  # zero rows contribute 0 to sum / sumsq
    return pl.pallas_call(
        _matmul_stats_kernel,
        grid=(Rp // tr,),
        in_specs=[pl.BlockSpec((tr, K), lambda i: (i, 0)),
                  pl.BlockSpec((K, C), lambda i: (0, 0))],      # weight stays resident
        out_specs=[pl.BlockSpec((tr, C), lambda i: (i, 0)),
                   pl.BlockSpec((1, C), lambda i: (0, 0)),      # resident accumulators
                   pl.BlockSpec((1, C), lambda i: (0, 0))],
        out_shape=(jax.ShapeDtypeStruct((Rp, C), z_dtype),
                   jax.ShapeDtypeStruct((1, C), jnp.float32),
                   jax.ShapeDtypeStruct((1, C), jnp.float32)),
        compiler_params=pltpu.CompilerParams(
            dimension_semantics=("arbitrary",),   # stats reduce across row tiles
            vmem_limit_bytes=_VMEM_LIMIT),
    )(x, w.astype(COMPUTE_DTYPE))


def scale_shift_relu(z, scale, shift, *, out_dtype, tile_rows=DEFAULT_TILE_ROWS):
    R, C = z.shape
    tr = min(tile_rows, _round_up(R, 8))
    Rp = _round_up(R, tr)
    z = _pad_rows(z, Rp)
    out = pl.pallas_call(
        _scale_shift_relu_kernel,
        grid=(Rp // tr,),
        in_specs=[pl.BlockSpec((tr, C), lambda i: (i, 0)),
                  pl.BlockSpec((1, C), lambda i: (0, 0)),
                  pl.BlockSpec((1, C), lambda i: (0, 0))],
        out_specs=pl.BlockSpec((tr, C), lambda i: (i, 0)),
        out_shape=jax.ShapeDtypeStruct((Rp, C), out_dtype),
        compiler_params=pltpu.CompilerParams(
            dimension_semantics=("parallel",),    # independent rows -> megacore-shardable
            vmem_limit_bytes=_VMEM_LIMIT),
    )(z, scale, shift)
    return out[:R]


def bn_relu_matmul_stats(z_in, scale, shift, w, *, tile_rows=DEFAULT_TILE_ROWS,
                         z_dtype=Z_DTYPE):
    R, K = z_in.shape
    C = w.shape[1]
    tr = min(tile_rows, _round_up(R, 8))
    Rp = _round_up(R, tr)
    z_in = _pad_rows(z_in, Rp)
    kernel = functools.partial(_bn_relu_matmul_stats_kernel, R if Rp != R else None)
    return pl.pallas_call(
        kernel,
        grid=(Rp // tr,),
        in_specs=[pl.BlockSpec((tr, K), lambda i: (i, 0)),
                  pl.BlockSpec((1, K), lambda i: (0, 0)),
                  pl.BlockSpec((1, K), lambda i: (0, 0)),
                  pl.BlockSpec((K, C), lambda i: (0, 0))],
        out_specs=[pl.BlockSpec((tr, C), lambda i: (i, 0)),
                   pl.BlockSpec((1, C), lambda i: (0, 0)),
                   pl.BlockSpec((1, C), lambda i: (0, 0))],
        out_shape=(jax.ShapeDtypeStruct((Rp, C), z_dtype),
                   jax.ShapeDtypeStruct((1, C), jnp.float32),
                   jax.ShapeDtypeStruct((1, C), jnp.float32)),
        compiler_params=pltpu.CompilerParams(
            dimension_semantics=("arbitrary",),
            vmem_limit_bytes=_VMEM_LIMIT),
    )(z_in, scale, shift, w.astype(COMPUTE_DTYPE))


def _bn_scale_shift(col_sum, col_ssq, count, gamma, beta):
    """Fold batch-stat BN into y -> y*scale + shift.  Conv bias cancels exactly."""
    mean = col_sum / count
    var = jnp.maximum(col_ssq / count - mean * mean, 0.0)     # biased var (training BN)
    scale = gamma.reshape(1, -1).astype(jnp.float32) * lax.rsqrt(var + EPS)
    shift = beta.reshape(1, -1).astype(jnp.float32) - mean * scale
    return scale, shift


def _subpixel_deconv_weight(wt2):
    """ConvTranspose2d(3, stride=2, pad=1, out_pad=1) as one (4*Cin, 4*Cout) matmul.

    Row block t=(di,dj) consumes input pixel (i+di, j+dj); column block p=(dy,dx)
    produces output pixel (2i+dy, 2j+dx).  Tap (di,dj) contributes to parity (dy,dx)
    with kernel index (ky,kx)=(dy-2di+1, dx-2dj+1) when that index is in range.
    """
    cin, cout = wt2.shape[0], wt2.shape[1]
    k_blocks = []
    for di in (0, 1):
        for dj in (0, 1):
            out_blocks = []
            for dy in (0, 1):
                for dx in (0, 1):
                    ky, kx = dy - 2 * di + 1, dx - 2 * dj + 1
                    if 0 <= ky <= 2 and 0 <= kx <= 2:
                        out_blocks.append(wt2[:, :, ky, kx])
                    else:
                        out_blocks.append(jnp.zeros((cin, cout), wt2.dtype))
            k_blocks.append(jnp.concatenate(out_blocks, axis=1))
    return jnp.concatenate(k_blocks, axis=0)


# ----------------------------------------------------------------------------
# Parameter init (deterministic, shapes match the PyTorch module's __init__)
# ----------------------------------------------------------------------------
def init_decoder_block_params(key, in_channels, n_filters):
    mid = in_channels // 4
    ks = jax.random.split(key, 12)

    def nrm(k, shape, scale=0.1):
        return scale * jax.random.normal(k, shape, jnp.float32)

    return dict(
        w1=nrm(ks[0], (mid, in_channels, 1, 1)),   # Conv2d weight, OIHW
        b1=nrm(ks[1], (mid,)),
        g1=1.0 + nrm(ks[2], (mid,)),               # BN gamma
        be1=nrm(ks[3], (mid,)),                    # BN beta
        wt2=nrm(ks[4], (mid, mid, 3, 3)),          # ConvTranspose2d weight (in, out, kH, kW)
        b2=nrm(ks[5], (mid,)),
        g2=1.0 + nrm(ks[6], (mid,)),
        be2=nrm(ks[7], (mid,)),
        w3=nrm(ks[8], (n_filters, mid, 1, 1)),     # Conv2d weight, OIHW
        b3=nrm(ks[9], (n_filters,)),
        g3=1.0 + nrm(ks[10], (n_filters,)),
        be3=nrm(ks[11], (n_filters,)),
    )


# ----------------------------------------------------------------------------
# DecoderBlock forward
# ----------------------------------------------------------------------------
def decoder_block_forward(params, x_nchw, *, tile_rows=DEFAULT_TILE_ROWS):
    N, Cin, H, W = x_nchw.shape
    mid = params["w1"].shape[0]
    nf = params["w3"].shape[0]
    R = N * H * W

    # ---- stage 1: 1x1 conv (channel matmul) + BN(batch stats) + ReLU ----
    x_rows = jnp.transpose(x_nchw, (0, 2, 3, 1)).reshape(R, Cin)
    w1 = params["w1"][:, :, 0, 0].T                                   # (Cin, mid)
    z1, s1, ss1 = matmul_stats(x_rows, w1, tile_rows=tile_rows)
    sc1, sh1 = _bn_scale_shift(s1, ss1, R, params["g1"], params["be1"])
    h1 = scale_shift_relu(z1, sc1, sh1, out_dtype=H_DTYPE, tile_rows=tile_rows)[:R]
    h1 = h1.reshape(N, H, W, mid)

    # ---- stage 2: ConvTranspose2d(3, s=2, p=1, op=1) as a sub-pixel matmul ----
    # 2x2 halo gather (4*mid cols) replaces the 9x zero-dilated im2col buffer.
    h1p = jnp.pad(h1, ((0, 0), (0, 1), (0, 1), (0, 0)))
    cols = jnp.concatenate(
        [h1p[:, :H, :W, :], h1p[:, :H, 1:, :], h1p[:, 1:, :W, :], h1p[:, 1:, 1:, :]],
        axis=-1).reshape(R, 4 * mid)
    w2 = _subpixel_deconv_weight(params["wt2"])                       # (4*mid, 4*mid)
    z2, s2, ss2 = matmul_stats(cols, w2, tile_rows=tile_rows)         # (Rp, 4*mid)
    # z2 columns are (parity class, channel): BN2 stats reduce over rows AND parity.
    s2 = s2.reshape(4, mid).sum(axis=0, keepdims=True)
    ss2 = ss2.reshape(4, mid).sum(axis=0, keepdims=True)
    sc2, sh2 = _bn_scale_shift(s2, ss2, 4 * R, params["g2"], params["be2"])
    z2 = z2[:R].reshape(4 * R, mid)            # back to one pixel per row: (n,i,j,dy,dx)

    # ---- stage 3 (fused): BN2+ReLU applied in-kernel, then 1x1 conv + BN3 stats ----
    w3 = params["w3"][:, :, 0, 0].T                                   # (mid, nf)
    z3, s3, ss3 = bn_relu_matmul_stats(z2, sc2, sh2, w3, tile_rows=tile_rows)
    sc3, sh3 = _bn_scale_shift(s3, ss3, 4 * R, params["g3"], params["be3"])
    out = scale_shift_relu(z3, sc3, sh3, out_dtype=jnp.float32,
                           tile_rows=tile_rows)[: 4 * R]

    # ---- un-shuffle parity layout -> (N, 2H, 2W, nf) -> NCHW ----
    out = out.reshape(N, H, W, 2, 2, nf).transpose(0, 1, 3, 2, 4, 5)
    out = out.reshape(N, 2 * H, 2 * W, nf)
    return jnp.transpose(out, (0, 3, 1, 2))


# ----------------------------------------------------------------------------
# Pure-JAX (XLA conv) reference for correctness checking.
# ----------------------------------------------------------------------------
def reference_forward(params, x):
    hi = lax.Precision.HIGHEST   # keep the reference at full f32 precision on TPU too

    def bn_relu(y, g, b):
        mean = jnp.mean(y, axis=(0, 2, 3), keepdims=True)
        var = jnp.mean((y - mean) ** 2, axis=(0, 2, 3), keepdims=True)
        yh = (y - mean) * lax.rsqrt(var + EPS)
        return jnp.maximum(yh * g.reshape(1, -1, 1, 1) + b.reshape(1, -1, 1, 1), 0.0)

    dn = ("NCHW", "OIHW", "NCHW")
    y = lax.conv_general_dilated(x, params["w1"], (1, 1), "VALID",
                                 dimension_numbers=dn, precision=hi)
    y = bn_relu(y + params["b1"].reshape(1, -1, 1, 1), params["g1"], params["be1"])

    wconv = jnp.flip(params["wt2"], axis=(2, 3)).transpose(1, 0, 2, 3)  # (out, in, 3, 3)
    y = lax.conv_general_dilated(
        y, wconv, (1, 1), [(1, 2), (1, 2)], lhs_dilation=(2, 2),
        dimension_numbers=dn, precision=hi)
    y = bn_relu(y + params["b2"].reshape(1, -1, 1, 1), params["g2"], params["be2"])

    y = lax.conv_general_dilated(y, params["w3"], (1, 1), "VALID",
                                 dimension_numbers=dn, precision=hi)
    y = bn_relu(y + params["b3"].reshape(1, -1, 1, 1), params["g3"], params["be3"])
    return y


if __name__ == "__main__":
    key = jax.random.PRNGKey(0)
    k_params, k_x = jax.random.split(key)

    in_channels, n_filters = 16, 8
    N, H, W = 2, 16, 16

    params = init_decoder_block_params(k_params, in_channels, n_filters)
    x = jax.random.normal(k_x, (N, in_channels, H, W), jnp.float32)

    # tile_rows=256 at this toy size exercises multi-tile grids and the cross-tile
    # stats accumulation; realistic sizes use the 512-row default.
    fwd = jax.jit(functools.partial(decoder_block_forward, tile_rows=256))
    out = jax.block_until_ready(fwd(params, x))
    ref = jax.block_until_ready(jax.jit(reference_forward)(params, x))

    assert out.shape == (N, n_filters, 2 * H, 2 * W)
    # f32 matmul path: discrepancy vs the XLA-conv reference is at f32 rounding level.
    np.testing.assert_allclose(np.asarray(out), np.asarray(ref), rtol=1e-2, atol=1e-2)
    print("KERNEL_OK")
</pallas_src>

<mosaic_0001>
module attributes {stable_mosaic.version = 11 : i64} {
  func.func @_matmul_stats_kernel(%arg0: i32, %arg1: memref<256x16xf32, #tpu.memory_space<vmem>>, %arg2: memref<16x4xf32, #tpu.memory_space<vmem>>, %arg3: memref<256x4xf32, #tpu.memory_space<vmem>>, %arg4: memref<1x4xf32, #tpu.memory_space<vmem>>, %arg5: memref<1x4xf32, #tpu.memory_space<vmem>>) attributes {dimension_semantics = [#tpu.dimension_semantics<arbitrary>], iteration_bounds = array<i64: 2>, scalar_prefetch = 0 : i64, scratch_operands = 0 : i64, tpu.core_type = #tpu.core_type<tc>, window_params = [{transform_indices = @transform_0, window_bounds = array<i64: 256, 16>}, {pipeline_mode = #tpu.pipeline_mode<synchronous>, transform_indices = @transform_1, window_bounds = array<i64: 16, 4>}, {transform_indices = @transform_2, window_bounds = array<i64: 256, 4>}, {pipeline_mode = #tpu.pipeline_mode<synchronous>, transform_indices = @transform_3, window_bounds = array<i64: 1, 4>}, {pipeline_mode = #tpu.pipeline_mode<synchronous>, transform_indices = @transform_4, window_bounds = array<i64: 1, 4>}]} {
    %c0_i32 = arith.constant 0 : i32
    %0 = arith.cmpi eq, %arg0, %c0_i32 : i32
    %1 = arith.extui %0 : i1 to i32
    %c0_i32_0 = arith.constant 0 : i32
    %2 = arith.cmpi ne, %1, %c0_i32_0 : i32
    scf.if %2 {
      %cst_16 = arith.constant 0.000000e+00 : f32
      %18 = vector.broadcast %cst_16 : f32 to vector<1x4xf32>
      %c0_17 = arith.constant 0 : index
      %c0_18 = arith.constant 0 : index
      %19 = vector.load %arg4[%c0_17, %c0_18] : memref<1x4xf32, #tpu.memory_space<vmem>>, vector<1x4xf32>
      tpu.vector_store %arg4[%c0_17, %c0_18], %18 {strides = array<i32>} : memref<1x4xf32, #tpu.memory_space<vmem>>, vector<1x4xf32>,
      %cst_19 = arith.constant 0.000000e+00 : f32
      %20 = vector.broadcast %cst_19 : f32 to vector<1x4xf32>
      %c0_20 = arith.constant 0 : index
      %c0_21 = arith.constant 0 : index
      %21 = vector.load %arg5[%c0_20, %c0_21] : memref<1x4xf32, #tpu.memory_space<vmem>>, vector<1x4xf32>
      tpu.vector_store %arg5[%c0_20, %c0_21], %20 {strides = array<i32>} : memref<1x4xf32, #tpu.memory_space<vmem>>, vector<1x4xf32>,
    } else {
    }
    %c0 = arith.constant 0 : index
    %c0_1 = arith.constant 0 : index
    %3 = vector.load %arg1[%c0, %c0_1] : memref<256x16xf32, #tpu.memory_space<vmem>>, vector<256x16xf32>
    %c0_2 = arith.constant 0 : index
    %c0_3 = arith.constant 0 : index
    %4 = vector.load %arg2[%c0_2, %c0_3] : memref<16x4xf32, #tpu.memory_space<vmem>>, vector<16x4xf32>
    %cst = arith.constant dense<0.000000e+00> : vector<256x4xf32>
    %5 = tpu.matmul %3, %4, %cst {dimension_numbers = #tpu.dot_dimension_numbers<[1], [0], [0], [1], [0, 0, 1, 1], [], []>} : vector<256x16xf32>, vector<16x4xf32>, vector<256x4xf32> -> vector<256x4xf32>
    %c0_4 = arith.constant 0 : index
    %c0_5 = arith.constant 0 : index
    %6 = vector.load %arg3[%c0_4, %c0_5] : memref<256x4xf32, #tpu.memory_space<vmem>>, vector<256x4xf32>
    tpu.vector_store %arg3[%c0_4, %c0_5], %5 {strides = array<i32>} : memref<256x4xf32, #tpu.memory_space<vmem>>, vector<256x4xf32>,
    %c0_6 = arith.constant 0 : index
    %c0_7 = arith.constant 0 : index
    %7 = vector.load %arg4[%c0_6, %c0_7] : memref<1x4xf32, #tpu.memory_space<vmem>>, vector<1x4xf32>
    %cst_8 = arith.constant dense<0.000000e+00> : vector<4xf32>
    %8 = vector.multi_reduction <add>, %5, %cst_8 [0] : vector<256x4xf32> to vector<4xf32>
    %9 = vector.shape_cast %8 : vector<4xf32> to vector<1x4xf32>
    %10 = arith.addf %7, %9 : vector<1x4xf32>
    %c0_9 = arith.constant 0 : index
    %c0_10 = arith.constant 0 : index
    %11 = vector.load %arg4[%c0_9, %c0_10] : memref<1x4xf32, #tpu.memory_space<vmem>>, vector<1x4xf32>
    tpu.vector_store %arg4[%c0_9, %c0_10], %10 {strides = array<i32>} : memref<1x4xf32, #tpu.memory_space<vmem>>, vector<1x4xf32>,
    %c0_11 = arith.constant 0 : index
    %c0_12 = arith.constant 0 : index
    %12 = vector.load %arg5[%c0_11, %c0_12] : memref<1x4xf32, #tpu.memory_space<vmem>>, vector<1x4xf32>
    %13 = arith.mulf %5, %5 : vector<256x4xf32>
    %cst_13 = arith.constant dense<0.000000e+00> : vector<4xf32>
    %14 = vector.multi_reduction <add>, %13, %cst_13 [0] : vector<256x4xf32> to vector<4xf32>
    %15 = vector.shape_cast %14 : vector<4xf32> to vector<1x4xf32>
    %16 = arith.addf %12, %15 : vector<1x4xf32>
    %c0_14 = arith.constant 0 : index
    %c0_15 = arith.constant 0 : index
    %17 = vector.load %arg5[%c0_14, %c0_15] : memref<1x4xf32, #tpu.memory_space<vmem>>, vector<1x4xf32>
    tpu.vector_store %arg5[%c0_14, %c0_15], %16 {strides = array<i32>} : memref<1x4xf32, #tpu.memory_space<vmem>>, vector<1x4xf32>,
    return
  }
  func.func @transform_0(%arg0: i32) -> (i32, i32) {
    %c0_i32 = arith.constant 0 : i32
    %c0_i32_0 = arith.constant 0 : i32
    return %arg0, %c0_i32 : i32, i32
  }
  func.func @transform_1(%arg0: i32) -> (i32, i32) {
    %c0_i32 = arith.constant 0 : i32
    %c0_i32_0 = arith.constant 0 : i32
    %c0_i32_1 = arith.constant 0 : i32
    return %c0_i32, %c0_i32_0 : i32, i32
  }
  func.func @transform_2(%arg0: i32) -> (i32, i32) {
    %c0_i32 = arith.constant 0 : i32
    %c0_i32_0 = arith.constant 0 : i32
    return %arg0, %c0_i32 : i32, i32
  }
  func.func @transform_3(%arg0: i32) -> (i32, i32) {
    %c0_i32 = arith.constant 0 : i32
    %c0_i32_0 = arith.constant 0 : i32
    %c0_i32_1 = arith.constant 0 : i32
    return %c0_i32, %c0_i32_0 : i32, i32
  }
  func.func @transform_4(%arg0: i32) -> (i32, i32) {
    %c0_i32 = arith.constant 0 : i32
    %c0_i32_0 = arith.constant 0 : i32
    %c0_i32_1 = arith.constant 0 : i32
    return %c0_i32, %c0_i32_0 : i32, i32
  }
}

module attributes {stable_mosaic.version = 11 : i64} {
  func.func @_scale_shift_relu_kernel(%arg0: i32, %arg1: memref<256x4xf32, #tpu.memory_space<vmem>>, %arg2: memref<1x4xf32, #tpu.memory_space<vmem>>, %arg3: memref<1x4xf32, #tpu.memory_space<vmem>>, %arg4: memref<256x4xf32, #tpu.memory_space<vmem>>) attributes {dimension_semantics = [#tpu.dimension_semantics<parallel>], iteration_bounds = array<i64: 2>, scalar_prefetch = 0 : i64, scratch_operands = 0 : i64, tpu.core_type = #tpu.core_type<tc>, window_params = [{transform_indices = @transform_0, window_bounds = array<i64: 256, 4>}, {pipeline_mode = #tpu.pipeline_mode<synchronous>, transform_indices = @transform_1, window_bounds = array<i64: 1, 4>}, {pipeline_mode = #tpu.pipeline_mode<synchronous>, transform_indices = @transform_2, window_bounds = array<i64: 1, 4>}, {transform_indices = @transform_3, window_bounds = array<i64: 256, 4>}]} {
    %c0 = arith.constant 0 : index
    %c0_0 = arith.constant 0 : index
    %0 = vector.load %arg1[%c0, %c0_0] : memref<256x4xf32, #tpu.memory_space<vmem>>, vector<256x4xf32>
    %c0_1 = arith.constant 0 : index
    %c0_2 = arith.constant 0 : index
    %1 = vector.load %arg2[%c0_1, %c0_2] : memref<1x4xf32, #tpu.memory_space<vmem>>, vector<1x4xf32>
    %2 = vector.broadcast %1 : vector<1x4xf32> to vector<256x4xf32>
    %3 = arith.mulf %0, %2 : vector<256x4xf32>
    %c0_3 = arith.constant 0 : index
    %c0_4 = arith.constant 0 : index
    %4 = vector.load %arg3[%c0_3, %c0_4] : memref<1x4xf32, #tpu.memory_space<vmem>>, vector<1x4xf32>
    %5 = vector.broadcast %4 : vector<1x4xf32> to vector<256x4xf32>
    %6 = arith.addf %3, %5 : vector<256x4xf32>
    %cst = arith.constant 0.000000e+00 : f32
    %7 = vector.broadcast %cst : f32 to vector<256x4xf32>
    %8 = arith.maximumf %6, %7 : vector<256x4xf32>
    %c0_5 = arith.constant 0 : index
    %c0_6 = arith.constant 0 : index
    %9 = vector.load %arg4[%c0_5, %c0_6] : memref<256x4xf32, #tpu.memory_space<vmem>>, vector<256x4xf32>
    tpu.vector_store %arg4[%c0_5, %c0_6], %8 {strides = array<i32>} : memref<256x4xf32, #tpu.memory_space<vmem>>, vector<256x4xf32>,
    return
  }
  func.func @transform_0(%arg0: i32) -> (i32, i32) {
    %c0_i32 = arith.constant 0 : i32
    %c0_i32_0 = arith.constant 0 : i32
    return %arg0, %c0_i32 : i32, i32
  }
  func.func @transform_1(%arg0: i32) -> (i32, i32) {
    %c0_i32 = arith.constant 0 : i32
    %c0_i32_0 = arith.constant 0 : i32
    %c0_i32_1 = arith.constant 0 : i32
    return %c0_i32, %c0_i32_0 : i32, i32
  }
  func.func @transform_2(%arg0: i32) -> (i32, i32) {
    %c0_i32 = arith.constant 0 : i32
    %c0_i32_0 = arith.constant 0 : i32
    %c0_i32_1 = arith.constant 0 : i32
    return %c0_i32, %c0_i32_0 : i32, i32
  }
  func.func @transform_3(%arg0: i32) -> (i32, i32) {
    %c0_i32 = arith.constant 0 : i32
    %c0_i32_0 = arith.constant 0 : i32
    return %arg0, %c0_i32 : i32, i32
  }
}

module attributes {stable_mosaic.version = 11 : i64} {
  func.func @_matmul_stats_kernel(%arg0: i32, %arg1: memref<256x16xf32, #tpu.memory_space<vmem>>, %arg2: memref<16x16xf32, #tpu.memory_space<vmem>>, %arg3: memref<256x16xf32, #tpu.memory_space<vmem>>, %arg4: memref<1x16xf32, #tpu.memory_space<vmem>>, %arg5: memref<1x16xf32, #tpu.memory_space<vmem>>) attributes {dimension_semantics = [#tpu.dimension_semantics<arbitrary>], iteration_bounds = array<i64: 2>, scalar_prefetch = 0 : i64, scratch_operands = 0 : i64, tpu.core_type = #tpu.core_type<tc>, window_params = [{transform_indices = @transform_0, window_bounds = array<i64: 256, 16>}, {pipeline_mode = #tpu.pipeline_mode<synchronous>, transform_indices = @transform_1, window_bounds = array<i64: 16, 16>}, {transform_indices = @transform_2, window_bounds = array<i64: 256, 16>}, {pipeline_mode = #tpu.pipeline_mode<synchronous>, transform_indices = @transform_3, window_bounds = array<i64: 1, 16>}, {pipeline_mode = #tpu.pipeline_mode<synchronous>, transform_indices = @transform_4, window_bounds = array<i64: 1, 16>}]} {
    %c0_i32 = arith.constant 0 : i32
    %0 = arith.cmpi eq, %arg0, %c0_i32 : i32
    %1 = arith.extui %0 : i1 to i32
    %c0_i32_0 = arith.constant 0 : i32
    %2 = arith.cmpi ne, %1, %c0_i32_0 : i32
    scf.if %2 {
      %cst_16 = arith.constant 0.000000e+00 : f32
      %18 = vector.broadcast %cst_16 : f32 to vector<1x16xf32>
      %c0_17 = arith.constant 0 : index
      %c0_18 = arith.constant 0 : index
      %19 = vector.load %arg4[%c0_17, %c0_18] : memref<1x16xf32, #tpu.memory_space<vmem>>, vector<1x16xf32>
      tpu.vector_store %arg4[%c0_17, %c0_18], %18 {strides = array<i32>} : memref<1x16xf32, #tpu.memory_space<vmem>>, vector<1x16xf32>,
      %cst_19 = arith.constant 0.000000e+00 : f32
      %20 = vector.broadcast %cst_19 : f32 to vector<1x16xf32>
      %c0_20 = arith.constant 0 : index
      %c0_21 = arith.constant 0 : index
      %21 = vector.load %arg5[%c0_20, %c0_21] : memref<1x16xf32, #tpu.memory_space<vmem>>, vector<1x16xf32>
      tpu.vector_store %arg5[%c0_20, %c0_21], %20 {strides = array<i32>} : memref<1x16xf32, #tpu.memory_space<vmem>>, vector<1x16xf32>,
    } else {
    }
    %c0 = arith.constant 0 : index
    %c0_1 = arith.constant 0 : index
    %3 = vector.load %arg1[%c0, %c0_1] : memref<256x16xf32, #tpu.memory_space<vmem>>, vector<256x16xf32>
    %c0_2 = arith.constant 0 : index
    %c0_3 = arith.constant 0 : index
    %4 = vector.load %arg2[%c0_2, %c0_3] : memref<16x16xf32, #tpu.memory_space<vmem>>, vector<16x16xf32>
    %cst = arith.constant dense<0.000000e+00> : vector<256x16xf32>
    %5 = tpu.matmul %3, %4, %cst {dimension_numbers = #tpu.dot_dimension_numbers<[1], [0], [0], [1], [0, 0, 1, 1], [], []>} : vector<256x16xf32>, vector<16x16xf32>, vector<256x16xf32> -> vector<256x16xf32>
    %c0_4 = arith.constant 0 : index
    %c0_5 = arith.constant 0 : index
    %6 = vector.load %arg3[%c0_4, %c0_5] : memref<256x16xf32, #tpu.memory_space<vmem>>, vector<256x16xf32>
    tpu.vector_store %arg3[%c0_4, %c0_5], %5 {strides = array<i32>} : memref<256x16xf32, #tpu.memory_space<vmem>>, vector<256x16xf32>,
    %c0_6 = arith.constant 0 : index
    %c0_7 = arith.constant 0 : index
    %7 = vector.load %arg4[%c0_6, %c0_7] : memref<1x16xf32, #tpu.memory_space<vmem>>, vector<1x16xf32>
    %cst_8 = arith.constant dense<0.000000e+00> : vector<16xf32>
    %8 = vector.multi_reduction <add>, %5, %cst_8 [0] : vector<256x16xf32> to vector<16xf32>
    %9 = vector.shape_cast %8 : vector<16xf32> to vector<1x16xf32>
    %10 = arith.addf %7, %9 : vector<1x16xf32>
    %c0_9 = arith.constant 0 : index
    %c0_10 = arith.constant 0 : index
    %11 = vector.load %arg4[%c0_9, %c0_10] : memref<1x16xf32, #tpu.memory_space<vmem>>, vector<1x16xf32>
    tpu.vector_store %arg4[%c0_9, %c0_10], %10 {strides = array<i32>} : memref<1x16xf32, #tpu.memory_space<vmem>>, vector<1x16xf32>,
    %c0_11 = arith.constant 0 : index
    %c0_12 = arith.constant 0 : index
    %12 = vector.load %arg5[%c0_11, %c0_12] : memref<1x16xf32, #tpu.memory_space<vmem>>, vector<1x16xf32>
    %13 = arith.mulf %5, %5 : vector<256x16xf32>
    %cst_13 = arith.constant dense<0.000000e+00> : vector<16xf32>
    %14 = vector.multi_reduction <add>, %13, %cst_13 [0] : vector<256x16xf32> to vector<16xf32>
    %15 = vector.shape_cast %14 : vector<16xf32> to vector<1x16xf32>
    %16 = arith.addf %12, %15 : vector<1x16xf32>
    %c0_14 = arith.constant 0 : index
    %c0_15 = arith.constant 0 : index
    %17 = vector.load %arg5[%c0_14, %c0_15] : memref<1x16xf32, #tpu.memory_space<vmem>>, vector<1x16xf32>
    tpu.vector_store %arg5[%c0_14, %c0_15], %16 {strides = array<i32>} : memref<1x16xf32, #tpu.memory_space<vmem>>, vector<1x16xf32>,
    return
  }
  func.func @transform_0(%arg0: i32) -> (i32, i32) {
    %c0_i32 = arith.constant 0 : i32
    %c0_i32_0 = arith.constant 0 : i32
    return %arg0, %c0_i32 : i32, i32
  }
  func.func @transform_1(%arg0: i32) -> (i32, i32) {
    %c0_i32 = arith.constant 0 : i32
    %c0_i32_0 = arith.constant 0 : i32
    %c0_i32_1 = arith.constant 0 : i32
    return %c0_i32, %c0_i32_0 : i32, i32
  }
  func.func @transform_2(%arg0: i32) -> (i32, i32) {
    %c0_i32 = arith.constant 0 : i32
    %c0_i32_0 = arith.constant 0 : i32
    return %arg0, %c0_i32 : i32, i32
  }
  func.func @transform_3(%arg0: i32) -> (i32, i32) {
    %c0_i32 = arith.constant 0 : i32
    %c0_i32_0 = arith.constant 0 : i32
    %c0_i32_1 = arith.constant 0 : i32
    return %c0_i32, %c0_i32_0 : i32, i32
  }
  func.func @transform_4(%arg0: i32) -> (i32, i32) {
    %c0_i32 = arith.constant 0 : i32
    %c0_i32_0 = arith.constant 0 : i32
    %c0_i32_1 = arith.constant 0 : i32
    return %c0_i32, %c0_i32_0 : i32, i32
  }
}

module attributes {stable_mosaic.version = 11 : i64} {
  func.func @_scale_shift_relu_kernel(%arg0: i32, %arg1: memref<256x8xf32, #tpu.memory_space<vmem>>, %arg2: memref<1x8xf32, #tpu.memory_space<vmem>>, %arg3: memref<1x8xf32, #tpu.memory_space<vmem>>, %arg4: memref<256x8xf32, #tpu.memory_space<vmem>>) attributes {dimension_semantics = [#tpu.dimension_semantics<parallel>], iteration_bounds = array<i64: 8>, scalar_prefetch = 0 : i64, scratch_operands = 0 : i64, tpu.core_type = #tpu.core_type<tc>, window_params = [{transform_indices = @transform_0, window_bounds = array<i64: 256, 8>}, {pipeline_mode = #tpu.pipeline_mode<synchronous>, transform_indices = @transform_1, window_bounds = array<i64: 1, 8>}, {pipeline_mode = #tpu.pipeline_mode<synchronous>, transform_indices = @transform_2, window_bounds = array<i64: 1, 8>}, {transform_indices = @transform_3, window_bounds = array<i64: 256, 8>}]} {
    %c0 = arith.constant 0 : index
    %c0_0 = arith.constant 0 : index
    %0 = vector.load %arg1[%c0, %c0_0] : memref<256x8xf32, #tpu.memory_space<vmem>>, vector<256x8xf32>
    %c0_1 = arith.constant 0 : index
    %c0_2 = arith.constant 0 : index
    %1 = vector.load %arg2[%c0_1, %c0_2] : memref<1x8xf32, #tpu.memory_space<vmem>>, vector<1x8xf32>
    %2 = vector.broadcast %1 : vector<1x8xf32> to vector<256x8xf32>
    %3 = arith.mulf %0, %2 : vector<256x8xf32>
    %c0_3 = arith.constant 0 : index
    %c0_4 = arith.constant 0 : index
    %4 = vector.load %arg3[%c0_3, %c0_4] : memref<1x8xf32, #tpu.memory_space<vmem>>, vector<1x8xf32>
    %5 = vector.broadcast %4 : vector<1x8xf32> to vector<256x8xf32>
    %6 = arith.addf %3, %5 : vector<256x8xf32>
    %cst = arith.constant 0.000000e+00 : f32
    %7 = vector.broadcast %cst : f32 to vector<256x8xf32>
    %8 = arith.maximumf %6, %7 : vector<256x8xf32>
    %c0_5 = arith.constant 0 : index
    %c0_6 = arith.constant 0 : index
    %9 = vector.load %arg4[%c0_5, %c0_6] : memref<256x8xf32, #tpu.memory_space<vmem>>, vector<256x8xf32>
    tpu.vector_store %arg4[%c0_5, %c0_6], %8 {strides = array<i32>} : memref<256x8xf32, #tpu.memory_space<vmem>>, vector<256x8xf32>,
    return
  }
  func.func @transform_0(%arg0: i32) -> (i32, i32) {
    %c0_i32 = arith.constant 0 : i32
    %c0_i32_0 = arith.constant 0 : i32
    return %arg0, %c0_i32 : i32, i32
  }
  func.func @transform_1(%arg0: i32) -> (i32, i32) {
    %c0_i32 = arith.constant 0 : i32
    %c0_i32_0 = arith.constant 0 : i32
    %c0_i32_1 = arith.constant 0 : i32
    return %c0_i32, %c0_i32_0 : i32, i32
  }
  func.func @transform_2(%arg0: i32) -> (i32, i32) {
    %c0_i32 = arith.constant 0 : i32
    %c0_i32_0 = arith.constant 0 : i32
    %c0_i32_1 = arith.constant 0 : i32
    return %c0_i32, %c0_i32_0 : i32, i32
  }
  func.func @transform_3(%arg0: i32) -> (i32, i32) {
    %c0_i32 = arith.constant 0 : i32
    %c0_i32_0 = arith.constant 0 : i32
    return %arg0, %c0_i32 : i32, i32
  }
}

module attributes {stable_mosaic.version = 11 : i64} {
  func.func @_bn_relu_matmul_stats_kernel(%arg0: i32, %arg1: memref<256x4xf32, #tpu.memory_space<vmem>>, %arg2: memref<1x4xf32, #tpu.memory_space<vmem>>, %arg3: memref<1x4xf32, #tpu.memory_space<vmem>>, %arg4: memref<4x8xf32, #tpu.memory_space<vmem>>, %arg5: memref<256x8xf32, #tpu.memory_space<vmem>>, %arg6: memref<1x8xf32, #tpu.memory_space<vmem>>, %arg7: memref<1x8xf32, #tpu.memory_space<vmem>>) attributes {dimension_semantics = [#tpu.dimension_semantics<arbitrary>], iteration_bounds = array<i64: 8>, scalar_prefetch = 0 : i64, scratch_operands = 0 : i64, tpu.core_type = #tpu.core_type<tc>, window_params = [{transform_indices = @transform_0, window_bounds = array<i64: 256, 4>}, {pipeline_mode = #tpu.pipeline_mode<synchronous>, transform_indices = @transform_1, window_bounds = array<i64: 1, 4>}, {pipeline_mode = #tpu.pipeline_mode<synchronous>, transform_indices = @transform_2, window_bounds = array<i64: 1, 4>}, {pipeline_mode = #tpu.pipeline_mode<synchronous>, transform_indices = @transform_3, window_bounds = array<i64: 4, 8>}, {transform_indices = @transform_4, window_bounds = array<i64: 256, 8>}, {pipeline_mode = #tpu.pipeline_mode<synchronous>, transform_indices = @transform_5, window_bounds = array<i64: 1, 8>}, {pipeline_mode = #tpu.pipeline_mode<synchronous>, transform_indices = @transform_6, window_bounds = array<i64: 1, 8>}]} {
    %c0_i32 = arith.constant 0 : i32
    %0 = arith.cmpi eq, %arg0, %c0_i32 : i32
    %1 = arith.extui %0 : i1 to i32
    %c0_i32_0 = arith.constant 0 : i32
    %2 = arith.cmpi ne, %1, %c0_i32_0 : i32
    scf.if %2 {
      %cst_21 = arith.constant 0.000000e+00 : f32
      %26 = vector.broadcast %cst_21 : f32 to vector<1x8xf32>
      %c0_22 = arith.constant 0 : index
      %c0_23 = arith.constant 0 : index
      %27 = vector.load %arg6[%c0_22, %c0_23] : memref<1x8xf32, #tpu.memory_space<vmem>>, vector<1x8xf32>
      tpu.vector_store %arg6[%c0_22, %c0_23], %26 {strides = array<i32>} : memref<1x8xf32, #tpu.memory_space<vmem>>, vector<1x8xf32>,
      %cst_24 = arith.constant 0.000000e+00 : f32
      %28 = vector.broadcast %cst_24 : f32 to vector<1x8xf32>
      %c0_25 = arith.constant 0 : index
      %c0_26 = arith.constant 0 : index
      %29 = vector.load %arg7[%c0_25, %c0_26] : memref<1x8xf32, #tpu.memory_space<vmem>>, vector<1x8xf32>
      tpu.vector_store %arg7[%c0_25, %c0_26], %28 {strides = array<i32>} : memref<1x8xf32, #tpu.memory_space<vmem>>, vector<1x8xf32>,
    } else {
    }
    %c0 = arith.constant 0 : index
    %c0_1 = arith.constant 0 : index
    %3 = vector.load %arg1[%c0, %c0_1] : memref<256x4xf32, #tpu.memory_space<vmem>>, vector<256x4xf32>
    %c0_2 = arith.constant 0 : index
    %c0_3 = arith.constant 0 : index
    %4 = vector.load %arg2[%c0_2, %c0_3] : memref<1x4xf32, #tpu.memory_space<vmem>>, vector<1x4xf32>
    %5 = vector.broadcast %4 : vector<1x4xf32> to vector<256x4xf32>
    %6 = arith.mulf %3, %5 : vector<256x4xf32>
    %c0_4 = arith.constant 0 : index
    %c0_5 = arith.constant 0 : index
    %7 = vector.load %arg3[%c0_4, %c0_5] : memref<1x4xf32, #tpu.memory_space<vmem>>, vector<1x4xf32>
    %8 = vector.broadcast %7 : vector<1x4xf32> to vector<256x4xf32>
    %9 = arith.addf %6, %8 : vector<256x4xf32>
    %cst = arith.constant 0.000000e+00 : f32
    %10 = vector.broadcast %cst : f32 to vector<256x4xf32>
    %11 = arith.maximumf %9, %10 : vector<256x4xf32>
    %c0_6 = arith.constant 0 : index
    %c0_7 = arith.constant 0 : index
    %12 = vector.load %arg4[%c0_6, %c0_7] : memref<4x8xf32, #tpu.memory_space<vmem>>, vector<4x8xf32>
    %cst_8 = arith.constant dense<0.000000e+00> : vector<256x8xf32>
    %13 = tpu.matmul %11, %12, %cst_8 {dimension_numbers = #tpu.dot_dimension_numbers<[1], [0], [0], [1], [0, 0, 1, 1], [], []>} : vector<256x4xf32>, vector<4x8xf32>, vector<256x8xf32> -> vector<256x8xf32>
    %c0_9 = arith.constant 0 : index
    %c0_10 = arith.constant 0 : index
    %14 = vector.load %arg5[%c0_9, %c0_10] : memref<256x8xf32, #tpu.memory_space<vmem>>, vector<256x8xf32>
    tpu.vector_store %arg5[%c0_9, %c0_10], %13 {strides = array<i32>} : memref<256x8xf32, #tpu.memory_space<vmem>>, vector<256x8xf32>,
    %c0_11 = arith.constant 0 : index
    %c0_12 = arith.constant 0 : index
    %15 = vector.load %arg6[%c0_11, %c0_12] : memref<1x8xf32, #tpu.memory_space<vmem>>, vector<1x8xf32>
    %cst_13 = arith.constant dense<0.000000e+00> : vector<8xf32>
    %16 = vector.multi_reduction <add>, %13, %cst_13 [0] : vector<256x8xf32> to vector<8xf32>
    %17 = vector.shape_cast %16 : vector<8xf32> to vector<1x8xf32>
    %18 = arith.addf %15, %17 : vector<1x8xf32>
    %c0_14 = arith.constant 0 : index
    %c0_15 = arith.constant 0 : index
    %19 = vector.load %arg6[%c0_14, %c0_15] : memref<1x8xf32, #tpu.memory_space<vmem>>, vector<1x8xf32>
    tpu.vector_store %arg6[%c0_14, %c0_15], %18 {strides = array<i32>} : memref<1x8xf32, #tpu.memory_space<vmem>>, vector<1x8xf32>,
    %c0_16 = arith.constant 0 : index
    %c0_17 = arith.constant 0 : index
    %20 = vector.load %arg7[%c0_16, %c0_17] : memref<1x8xf32, #tpu.memory_space<vmem>>, vector<1x8xf32>
    %21 = arith.mulf %13, %13 : vector<256x8xf32>
    %cst_18 = arith.constant dense<0.000000e+00> : vector<8xf32>
    %22 = vector.multi_reduction <add>, %21, %cst_18 [0] : vector<256x8xf32> to vector<8xf32>
    %23 = vector.shape_cast %22 : vector<8xf32> to vector<1x8xf32>
    %24 = arith.addf %20, %23 : vector<1x8xf32>
    %c0_19 = arith.constant 0 : index
    %c0_20 = arith.constant 0 : index
    %25 = vector.load %arg7[%c0_19, %c0_20] : memref<1x8xf32, #tpu.memory_space<vmem>>, vector<1x8xf32>
    tpu.vector_store %arg7[%c0_19, %c0_20], %24 {strides = array<i32>} : memref<1x8xf32, #tpu.memory_space<vmem>>, vector<1x8xf32>,
    return
  }
  func.func @transform_0(%arg0: i32) -> (i32, i32) {
    %c0_i32 = arith.constant 0 : i32
    %c0_i32_0 = arith.constant 0 : i32
    return %arg0, %c0_i32 : i32, i32
  }
  func.func @transform_1(%arg0: i32) -> (i32, i32) {
    %c0_i32 = arith.constant 0 : i32
    %c0_i32_0 = arith.constant 0 : i32
    %c0_i32_1 = arith.constant 0 : i32
    return %c0_i32, %c0_i32_0 : i32, i32
  }
  func.func @transform_2(%arg0: i32) -> (i32, i32) {
    %c0_i32 = arith.constant 0 : i32
    %c0_i32_0 = arith.constant 0 : i32
    %c0_i32_1 = arith.constant 0 : i32
    return %c0_i32, %c0_i32_0 : i32, i32
  }
  func.func @transform_3(%arg0: i32) -> (i32, i32) {
    %c0_i32 = arith.constant 0 : i32
    %c0_i32_0 = arith.constant 0 : i32
    %c0_i32_1 = arith.constant 0 : i32
    return %c0_i32, %c0_i32_0 : i32, i32
  }
  func.func @transform_4(%arg0: i32) -> (i32, i32) {
    %c0_i32 = arith.constant 0 : i32
    %c0_i32_0 = arith.constant 0 : i32
    return %arg0, %c0_i32 : i32, i32
  }
  func.func @transform_5(%arg0: i32) -> (i32, i32) {
    %c0_i32 = arith.constant 0 : i32
    %c0_i32_0 = arith.constant 0 : i32
    %c0_i32_1 = arith.constant 0 : i32
    return %c0_i32, %c0_i32_0 : i32, i32
  }
  func.func @transform_6(%arg0: i32) -> (i32, i32) {
    %c0_i32 = arith.constant 0 : i32
    %c0_i32_0 = arith.constant 0 : i32
    %c0_i32_1 = arith.constant 0 : i32
    return %c0_i32, %c0_i32_0 : i32, i32
  }
}

</mosaic_0001>

<bundles_post_ra>
// kernel: decoder_block_forward.6
= control target key start
LH: loop header
LB: loop body
LE: loop exit
PB: predicated region body
PF: predicated region fallthrough
CT: control target
= control target key end

     0   :  { %s454_s12 = smov 0   ;;  %s645_s0 = inlined_call_operand.vmem [shape: f32[512,4], index: 0, kind: input, shape index: {}]   ;;  %s646_s1 = inlined_call_operand.vmem [shape: f32[1,4], index: 1, kind: input, shape index: {}]   ;;  %s647_s2 = inlined_call_operand.vmem [shape: f32[1,4], index: 2, kind: input, shape index: {}]   ;;  %s648_s3 = inlined_call_operand.vmem [shape: f32[512,4], index: 3, kind: output, shape index: {}]  }
   0x1 LB: > { %s405_s13 = sadd.s32 4294967295, %s432_s12   ;;  %p409_p0 = scmp.ge.s32.totalorder %s432_s12, 1  ;;  %s432_s12 = sphi %s454_s12, %s13_s12  }
   0x2   : > { %p138_p1 = scmp.lt.s32.totalorder %s432_s12, 3 }
   0x4   : > { %p139_p2 = pnand %p409_p0, %p138_p1 }
   0x5   : > { %s410_s14 = sshll.u32 (!%p139_p2), %s405_s13, 5  ;;  %v465_v0 = vld [vmem:[%s646_s1] ss:$0 sm:$0xff] (!%p139_p2)  ;;  %vm316_vm0 = vcmask (!%p139_p2), 31744  }
   0x6   : > { %142 = sbr.rel (%p139_p2) target bundleno = 46 (0x2e), region = 32  ;;  %p163_p3 = scmp.lt.s32.totalorder (!%p139_p2), %s410_s14, 63  ;;  %v475_v1 = vld [vmem:[%s647_s2] ss:$0 sm:$0xff] (!%p139_p2) }
   0xd   : > { %s650_s14 = smov (!%p163_p3, %s410_s14), 63 }
   0xe   : > { %s411_s15 = sshll.u32 %s650_s14, 3 }
   0xf   : > { %s470_s20 = scalar_lea.vmem %s645_s0, %s411_s15  ;;  %s498_s25 = scalar_lea.vmem %s648_s3, %s411_s15 }
  0x10   : > { %v174_v2 = vld [vmem:[%s470_s20] sm:$0xff]  ;;  %v175_v3 = vld [vmem:[%s470_s20 + $0x8] sm:$0xff]  ;;  %v176_v4 = vld [vmem:[%s470_s20 + $0x10] sm:$0xff] }
  0x11   : > { %v213_v5 = vmul.f32 %v465_v0, %v174_v2  ;;  %v214_v6 = vmul.f32 %v465_v0, %v175_v3  ;;  %v215_v7 = vmul.f32 %v465_v0, %v176_v4  ;;  %v177_v8 = vld [vmem:[%s470_s20 + $0x18] sm:$0xff]  ;;  %v178_v9 = vld [vmem:[%s470_s20 + $0x20] sm:$0xff]  ;;  %v179_v10 = vld [vmem:[%s470_s20 + $0x28] sm:$0xff] }
  0x12   : > { %v216_v11 = vmul.f32 %v465_v0, %v177_v8  ;;  %v217_v12 = vmul.f32 %v465_v0, %v178_v9  ;;  %v218_v13 = vmul.f32 %v465_v0, %v179_v10  ;;  %v180_v14 = vld [vmem:[%s470_s20 + $0x30] sm:$0xff]  ;;  %v181_v15 = vld [vmem:[%s470_s20 + $0x38] sm:$0xff]  ;;  %v182_v24 = vld [vmem:[%s470_s20 + $0x40] sm:$0xff] }
  0x13   : > { %v252_v16 = vadd.f32 %v475_v1, %v213_v5  ;;  %v253_v17 = vadd.f32 %v475_v1, %v214_v6  ;;  %v254_v18 = vadd.f32 %v475_v1, %v215_v7  ;;  %v219_v19 = vmul.f32 %v465_v0, %v180_v14  ;;  %v183_v25 = vld [vmem:[%s470_s20 + $0x48] sm:$0xff]  ;;  %v184_v26 = vld [vmem:[%s470_s20 + $0x50] sm:$0xff]  ;;  %v185_v31 = vld [vmem:[%s470_s20 + $0x58] sm:$0xff] }
  0x14   : > { %v255_v20 = vadd.f32 %v475_v1, %v216_v11  ;;  %v256_v21 = vadd.f32 %v475_v1, %v217_v12  ;;  %v257_v22 = vadd.f32 %v475_v1, %v218_v13  ;;  %v220_v23 = vmul.f32 %v465_v0, %v181_v15  ;;  %v186_v32 = vld [vmem:[%s470_s20 + $0x60] sm:$0xff]  ;;  %v187_v33 = vld [vmem:[%s470_s20 + $0x68] sm:$0xff]  ;;  %v188_v38 = vld [vmem:[%s470_s20 + $0x70] sm:$0xff] }
  0x15   : > { %v284_v27 = vmax.f32 %v252_v16, 0.0  ;;  %v285_v28 = vmax.f32 %v253_v17, 0.0  ;;  %v286_v29 = vmax.f32 %v254_v18, 0.0  ;;  %v258_v30 = vadd.f32 %v475_v1, %v219_v19  ;;  %v189_v43 = vld [vmem:[%s470_s20 + $0x78] sm:$0xff]  ;;  %v190_v56 = vld [vmem:[%s470_s20 + $0x80] sm:$0xff]  ;;  %v191_v57 = vld [vmem:[%s470_s20 + $0x88] sm:$0xff] }
  0x16   : > { %v287_v34 = vmax.f32 %v255_v20, 0.0  ;;  %v288_v35 = vmax.f32 %v256_v21, 0.0  ;;  %v289_v36 = vmax.f32 %v257_v22, 0.0  ;;  %v259_v37 = vadd.f32 %v475_v1, %v220_v23  ;;  %v192_v58 = vld [vmem:[%s470_s20 + $0x90] sm:$0xff]  ;;  %v193_v63 = vld [vmem:[%s470_s20 + $0x98] sm:$0xff]  ;;  %v194_v2 = vld [vmem:[%s470_s20 + $0xa0] sm:$0xff] }
  0x17   : > { %317 = vst.msk [vmem:[%s498_s25] sm:$0xff] %vm316_vm0, %v284_v27  ;;  %318 = vst.msk [vmem:[%s498_s25 + $0x8] sm:$0xff] %vm316_vm0, %v285_v28  ;;  %v290_v39 = vmax.f32 %v258_v30, 0.0  ;;  %v221_v40 = vmul.f32 %v465_v0, %v182_v24  ;;  %v222_v41 = vmul.f32 %v465_v0, %v183_v25  ;;  %v223_v42 = vmul.f32 %v465_v0, %v184_v26  ;;  %v195_v3 = vld [vmem:[%s470_s20 + $0xa8] sm:$0xff]  ;;  %v196_v8 = vld [vmem:[%s470_s20 + $0xb0] sm:$0xff] }
  0x18   : > { %319 = vst.msk [vmem:[%s498_s25 + $0x10] sm:$0xff] %vm316_vm0, %v286_v29  ;;  %320 = vst.msk [vmem:[%s498_s25 + $0x18] sm:$0xff] %vm316_vm0, %v287_v34  ;;  %v291_v44 = vmax.f32 %v259_v37, 0.0  ;;  %v224_v45 = vmul.f32 %v465_v0, %v185_v31  ;;  %v225_v46 = vmul.f32 %v465_v0, %v186_v32  ;;  %v226_v47 = vmul.f32 %v465_v0, %v187_v33  ;;  %v197_v13 = vld [vmem:[%s470_s20 + $0xb8] sm:$0xff]  ;;  %v198_v26 = vld [vmem:[%s470_s20 + $0xc0] sm:$0xff] }
  0x19   : > { %321 = vst.msk [vmem:[%s498_s25 + $0x20] sm:$0xff] %vm316_vm0, %v288_v35  ;;  %322 = vst.msk [vmem:[%s498_s25 + $0x28] sm:$0xff] %vm316_vm0, %v289_v36  ;;  %v260_v48 = vadd.f32 %v475_v1, %v221_v40  ;;  %v261_v49 = vadd.f32 %v475_v1, %v222_v41  ;;  %v262_v50 = vadd.f32 %v475_v1, %v223_v42  ;;  %v199_v27 = vld [vmem:[%s470_s20 + $0xc8] sm:$0xff]  ;;  %v200_v28 = vld [vmem:[%s470_s20 + $0xd0] sm:$0xff] }
  0x1a   : > { %323 = vst.msk [vmem:[%s498_s25 + $0x30] sm:$0xff] %vm316_vm0, %v290_v39  ;;  %v227_v51 = vmul.f32 %v465_v0, %v188_v38  ;;  %324 = vst.msk [vmem:[%s498_s25 + $0x38] sm:$0xff] %vm316_vm0, %v291_v44  ;;  %v263_v52 = vadd.f32 %v475_v1, %v224_v45  ;;  %v264_v53 = vadd.f32 %v475_v1, %v225_v46  ;;  %v201_v33 = vld [vmem:[%s470_s20 + $0xd8] sm:$0xff]  ;;  %v202_v34 = vld [vmem:[%s470_s20 + $0xe0] sm:$0xff] }
  0x1b   : > { %v265_v54 = vadd.f32 %v475_v1, %v226_v47  ;;  %v228_v55 = vmul.f32 %v465_v0, %v189_v43  ;;  %v292_v59 = vmax.f32 %v260_v48, 0.0  ;;  %v293_v60 = vmax.f32 %v261_v49, 0.0  ;;  %v203_v35 = vld [vmem:[%s470_s20 + $0xe8] sm:$0xff]  ;;  %v204_v40 = vld [vmem:[%s470_s20 + $0xf0] sm:$0xff]  ;;  %v205_v45 = vld [vmem:[%s470_s20 + $0xf8] sm:$0xff] }
  0x1c   : > { %v294_v61 = vmax.f32 %v262_v50, 0.0  ;;  %v266_v62 = vadd.f32 %v475_v1, %v227_v51  ;;  %v295_v4 = vmax.f32 %v263_v52, 0.0  ;;  %v296_v5 = vmax.f32 %v264_v53, 0.0 }
  0x1d   : > { %v297_v6 = vmax.f32 %v265_v54, 0.0  ;;  %v267_v7 = vadd.f32 %v475_v1, %v228_v55  ;;  %325 = vst.msk [vmem:[%s498_s25 + $0x40] sm:$0xff] %vm316_vm0, %v292_v59  ;;  %326 = vst.msk [vmem:[%s498_s25 + $0x48] sm:$0xff] %vm316_vm0, %v293_v60  ;;  %v229_v10 = vmul.f32 %v465_v0, %v190_v56  ;;  %v230_v11 = vmul.f32 %v465_v0, %v191_v57 }
  0x1e   : > { %327 = vst.msk [vmem:[%s498_s25 + $0x50] sm:$0xff] %vm316_vm0, %v294_v61  ;;  %v298_v9 = vmax.f32 %v266_v62, 0.0  ;;  %v231_v12 = vmul.f32 %v465_v0, %v192_v58  ;;  %328 = vst.msk [vmem:[%s498_s25 + $0x58] sm:$0xff] %vm316_vm0, %v295_v4  ;;  %v232_v15 = vmul.f32 %v465_v0, %v193_v63  ;;  %v233_v16 = vmul.f32 %v465_v0, %v194_v2 }
  0x1f   : > { %329 = vst.msk [vmem:[%s498_s25 + $0x60] sm:$0xff] %vm316_vm0, %v296_v5  ;;  %330 = vst.msk [vmem:[%s498_s25 + $0x68] sm:$0xff] %vm316_vm0, %v297_v6  ;;  %v299_v14 = vmax.f32 %v267_v7, 0.0  ;;  %v234_v17 = vmul.f32 %v465_v0, %v195_v3  ;;  %v268_v18 = vadd.f32 %v475_v1, %v229_v10  ;;  %v269_v19 = vadd.f32 %v475_v1, %v230_v11 }
  0x20   : > { %331 = vst.msk [vmem:[%s498_s25 + $0x70] sm:$0xff] %vm316_vm0, %v298_v9  ;;  %v270_v20 = vadd.f32 %v475_v1, %v231_v12  ;;  %v235_v21 = vmul.f32 %v465_v0, %v196_v8  ;;  %v271_v22 = vadd.f32 %v475_v1, %v232_v15  ;;  %v272_v23 = vadd.f32 %v475_v1, %v233_v16 }
  0x21   : > { %332 = vst.msk [vmem:[%s498_s25 + $0x78] sm:$0xff] %vm316_vm0, %v299_v14  ;;  %v273_v24 = vadd.f32 %v475_v1, %v234_v17  ;;  %v236_v25 = vmul.f32 %v465_v0, %v197_v13  ;;  %v300_v29 = vmax.f32 %v268_v18, 0.0  ;;  %v301_v30 = vmax.f32 %v269_v19, 0.0 }
  0x22   : > { %v302_v31 = vmax.f32 %v270_v20, 0.0  ;;  %v274_v32 = vadd.f32 %v475_v1, %v235_v21  ;;  %v303_v36 = vmax.f32 %v271_v22, 0.0  ;;  %v304_v37 = vmax.f32 %v272_v23, 0.0 }
  0x23   : > { %v305_v38 = vmax.f32 %v273_v24, 0.0  ;;  %v275_v39 = vadd.f32 %v475_v1, %v236_v25  ;;  %333 = vst.msk [vmem:[%s498_s25 + $0x80] sm:$0xff] %vm316_vm0, %v300_v29  ;;  %334 = vst.msk [vmem:[%s498_s25 + $0x88] sm:$0xff] %vm316_vm0, %v301_v30  ;;  %v237_v42 = vmul.f32 %v465_v0, %v198_v26  ;;  %v238_v43 = vmul.f32 %v465_v0, %v199_v27 }
  0x24   : > { %335 = vst.msk [vmem:[%s498_s25 + $0x90] sm:$0xff] %vm316_vm0, %v302_v31  ;;  %v306_v41 = vmax.f32 %v274_v32, 0.0  ;;  %v239_v44 = vmul.f32 %v465_v0, %v200_v28  ;;  %336 = vst.msk [vmem:[%s498_s25 + $0x98] sm:$0xff] %vm316_vm0, %v303_v36  ;;  %v240_v47 = vmul.f32 %v465_v0, %v201_v33  ;;  %v241_v48 = vmul.f32 %v465_v0, %v202_v34 }
  0x25   : > { %337 = vst.msk [vmem:[%s498_s25 + $0xa0] sm:$0xff] %vm316_vm0, %v304_v37  ;;  %338 = vst.msk [vmem:[%s498_s25 + $0xa8] sm:$0xff] %vm316_vm0, %v305_v38  ;;  %v307_v46 = vmax.f32 %v275_v39, 0.0  ;;  %v242_v49 = vmul.f32 %v465_v0, %v203_v35  ;;  %v276_v50 = vadd.f32 %v475_v1, %v237_v42  ;;  %v277_v51 = vadd.f32 %v475_v1, %v238_v43 }
  0x26   : > { %339 = vst.msk [vmem:[%s498_s25 + $0xb0] sm:$0xff] %vm316_vm0, %v306_v41  ;;  %v278_v52 = vadd.f32 %v475_v1, %v239_v44  ;;  %v243_v53 = vmul.f32 %v465_v0, %v204_v40  ;;  %v279_v54 = vadd.f32 %v475_v1, %v240_v47  ;;  %v280_v55 = vadd.f32 %v475_v1, %v241_v48 }
  0x27   : > { %340 = vst.msk [vmem:[%s498_s25 + $0xb8] sm:$0xff] %vm316_vm0, %v307_v46  ;;  %v281_v56 = vadd.f32 %v475_v1, %v242_v49  ;;  %v244_v57 = vmul.f32 %v465_v0, %v205_v45  ;;  %v308_v58 = vmax.f32 %v276_v50, 0.0  ;;  %v309_v59 = vmax.f32 %v277_v51, 0.0 }
  0x28   : > { %v310_v60 = vmax.f32 %v278_v52, 0.0  ;;  %v282_v61 = vadd.f32 %v475_v1, %v243_v53  ;;  %v311_v62 = vmax.f32 %v279_v54, 0.0  ;;  %v312_v63 = vmax.f32 %v280_v55, 0.0 }
  0x29   : > { %v313_v2 = vmax.f32 %v281_v56, 0.0  ;;  %v283_v3 = vadd.f32 %v475_v1, %v244_v57  ;;  %341 = vst.msk [vmem:[%s498_s25 + $0xc0] sm:$0xff] %vm316_vm0, %v308_v58  ;;  %342 = vst.msk [vmem:[%s498_s25 + $0xc8] sm:$0xff] %vm316_vm0, %v309_v59 }
  0x2a   : > { %343 = vst.msk [vmem:[%s498_s25 + $0xd0] sm:$0xff] %vm316_vm0, %v310_v60  ;;  %v314_v4 = vmax.f32 %v282_v61, 0.0  ;;  %344 = vst.msk [vmem:[%s498_s25 + $0xd8] sm:$0xff] %vm316_vm0, %v311_v62 }
  0x2b   : > { %345 = vst.msk [vmem:[%s498_s25 + $0xe0] sm:$0xff] %vm316_vm0, %v312_v63  ;;  %346 = vst.msk [vmem:[%s498_s25 + $0xe8] sm:$0xff] %vm316_vm0, %v313_v2  ;;  %v315_v0 = vmax.f32 %v283_v3, 0.0 }
  0x2c   : > { %347 = vst.msk [vmem:[%s498_s25 + $0xf0] sm:$0xff] %vm316_vm0, %v314_v4 }
  0x2d   : > { %348 = vst.msk [vmem:[%s498_s25 + $0xf8] sm:$0xff] %vm316_vm0, %v315_v0 }
  0x2e PF: > { %s13_s12 = sadd.s32 1, %s432_s12  }
  0x2f   : > { %p10_p4 = scmp.ge.s32.totalorder %s13_s12, 4  }
  0x31   :  { %12 = sbr.rel (!%p10_p4) target bundleno = 1 (0x1), region = 62 }

// kernel: decoder_block_forward.5
= control target key start
LH: loop header
LB: loop body
LE: loop exit
PB: predicated region body
PF: predicated region fallthrough
CT: control target
= control target key end

     0   :  { %s1016_s15 = smov 0   ;;  %s1352_s0 = inlined_call_operand.vmem [shape: f32[512,16], index: 0, kind: input, shape index: {}]   ;;  %s1353_s1 = inlined_call_operand.vmem [shape: f32[16,4], index: 1, kind: input, shape index: {}]   ;;  %s1354_s2 = inlined_call_operand.vmem [shape: f32[512,4], index: 2, kind: output, shape index: {0}]   ;;  %s1355_s3 = inlined_call_operand.vmem [shape: f32[1,4], index: 3, kind: output, shape index: {1}]   ;;  %s1356_s4 = inlined_call_operand.vmem [shape: f32[1,4], index: 4, kind: output, shape index: {2}]  }
   0x1 LB: > { %s837_s16 = sadd.s32 4294967295, %s988_s15   ;;  %p841_p0 = scmp.ge.s32.totalorder %s988_s15, 1  ;;  %s988_s15 = sphi %s1016_s15, %s15_s15  }
   0x2   : > { %p158_p1 = scmp.lt.s32.totalorder %s988_s15, 3 }
   0x4   : > { %p159_p2 = pnand %p841_p0, %p158_p1 }
   0x5   : > { %s842_s17 = sshll.u32 (!%p159_p2), %s837_s16, 5  ;;  %p846_p4 = scmp.ne.s32.totalorder (!%p159_p2), %s837_s16, 0 }
   0x6   : > { %162 = sbr.rel (%p159_p2) target bundleno = 322 (0x142), region = 28  ;;  %p185_p3 = scmp.lt.s32.totalorder (!%p159_p2), %s842_s17, 63 }
   0xd   : > { %s1358_s17 = smov (!%p185_p3, %s842_s17), 63  ;;  %199 = sbr.rel (%p846_p4) target bundleno = 20 (0x14), region = 32 }
   0xe   : > { %s843_s18 = sshll.u32 %s1358_s17, 3  ;;  %vm200_vm0 = vcmask (!%p846_p4), 24576   ;;  %v990_v0 = vmov (!%p846_p4), 0.0  }
   0xf   : > { %s1027_s21 = scalar_lea.vmem %s1352_s0, %s843_s18  ;;  %s1032_s24 = scalar_lea.vmem %s1354_s2, %s843_s18  ;;  %201 = vst.msk [vmem:[%s1355_s3] sm:$0x1] (!%p846_p4), %vm200_vm0, %v990_v0  ;;  %202 = vst.msk [vmem:[%s1356_s4] sm:$0x1] (!%p846_p4), %vm200_vm0, %v990_v0 }
  0x14 PF: > { %v235_v1 = vld [vmem:[%s1353_s1] sm:$0xff]  ;;  %v236_v2 = vld [vmem:[%s1353_s1 + $0x8] sm:$0xff]  ;;  %vm237_vm1 = vcmask 130048   ;;  %v205_v6 = vld [vmem:[%s1027_s21 + $0x10] sm:$0xff]  ;;  %vm559_vm2 = vcmask 31744   ;;  %vm663_vm3 = vcmask 24576  }
  0x15   : > { %v203_v3 = vld [vmem:[%s1027_s21] sm:$0xff]  ;;  %v967_v4 = vpack.c.bf16 %v236_v2, %v235_v1  ;;  %v204_v5 = vld [vmem:[%s1027_s21 + $0x8] sm:$0xff]  ;;  %v221_v9 = vld [vmem:[%s1027_s21 + $0x90] sm:$0xff] }
  0x16   : > { %919 = vmatprep.mubr.msk.f32.mxu0 %vm237_vm1, %v203_v3  ;;  %v219_v7 = vld [vmem:[%s1027_s21 + $0x80] sm:$0xff]  ;;  %v220_v8 = vld [vmem:[%s1027_s21 + $0x88] sm:$0xff]  ;;  %v206_v10 = vld [vmem:[%s1027_s21 + $0x18] sm:$0xff] }
  0x17   : > { %968 = vmatprep.subr.bf16.mxu0 %v967_v4  ;;  %971 = vmatprep.subr.bf16.mxu1 %v967_v4  ;;  %v207_v11 = vld [vmem:[%s1027_s21 + $0x20] sm:$0xff]  ;;  %v222_v12 = vld [vmem:[%s1027_s21 + $0x98] sm:$0xff]  ;;  %v208_v14 = vld [vmem:[%s1027_s21 + $0x28] sm:$0xff] }
  0x18   : > { %970 = vmatpush3.bf16.msra.mxu0 %v967_v4  ;;  %972 = vmatpush3.bf16.msra.mxu1 %v967_v4  ;;  %v223_v13 = vld [vmem:[%s1027_s21 + $0xa0] sm:$0xff]  ;;  %v209_v15 = vld [vmem:[%s1027_s21 + $0x30] sm:$0xff]  ;;  %v224_v16 = vld [vmem:[%s1027_s21 + $0xa8] sm:$0xff] }
  0x19   : > { %943 = vmatprep.mubr.msk.f32.mxu1 %vm237_vm1, %v219_v7  ;;  %v225_v17 = vld [vmem:[%s1027_s21 + $0xb0] sm:$0xff]  ;;  %v210_v18 = vld [vmem:[%s1027_s21 + $0x38] sm:$0xff]  ;;  %v211_v19 = vld [vmem:[%s1027_s21 + $0x40] sm:$0xff] }
  0x1a   : > { %v226_v20 = vld [vmem:[%s1027_s21 + $0xb8] sm:$0xff]  ;;  %v227_v21 = vld [vmem:[%s1027_s21 + $0xc0] sm:$0xff]  ;;  %v212_v22 = vld [vmem:[%s1027_s21 + $0x48] sm:$0xff] }
  0x1b   : > { %920 = vmatmul.mubr.msk.f32.vlgmr.msra.gmra.mrb[0].mxu0 %vm237_vm1, %v204_v5  ;;  %944 = vmatmul.mubr.msk.f32.vlgmr.msra.gmra.mrb[0].mxu1 %vm237_vm1, %v220_v8  ;;  %v213_v23 = vld [vmem:[%s1027_s21 + $0x50] sm:$0xff]  ;;  %v228_v24 = vld [vmem:[%s1027_s21 + $0xc8] sm:$0xff]  ;;  %v214_v26 = vld [vmem:[%s1027_s21 + $0x58] sm:$0xff] }
  0x1c   : > { %922 = vmatprep.mubr.msk.f32.mxu0 %vm237_vm1, %v205_v6  ;;  %946 = vmatprep.mubr.msk.f32.mxu1 %vm237_vm1, %v221_v9  ;;  %v229_v25 = vld [vmem:[%s1027_s21 + $0xd0] sm:$0xff]  ;;  %v215_v27 = vld [vmem:[%s1027_s21 + $0x60] sm:$0xff]  ;;  %v230_v28 = vld [vmem:[%s1027_s21 + $0xd8] sm:$0xff] }
  0x1d   : > { %v231_v29 = vld [vmem:[%s1027_s21 + $0xe0] sm:$0xff]  ;;  %v216_v30 = vld [vmem:[%s1027_s21 + $0x68] sm:$0xff]  ;;  %v217_v31 = vld [vmem:[%s1027_s21 + $0x70] sm:$0xff] }
  0x1e   : > { %v232_v32 = vld [vmem:[%s1027_s21 + $0xe8] sm:$0xff]  ;;  %v233_v33 = vld [vmem:[%s1027_s21 + $0xf0] sm:$0xff]  ;;  %v218_v34 = vld [vmem:[%s1027_s21 + $0x78] sm:$0xff] }
  0x1f   : > { %923 = vmatmul.mubr.msk.f32.gmra.mrb[2].mxu0 %vm237_vm1, %v206_v10  ;;  %947 = vmatmul.mubr.msk.f32.gmra.mrb[2].mxu1 %vm237_vm1, %v222_v12  ;;  %v234_v35 = vld [vmem:[%s1027_s21 + $0xf8] sm:$0xff] }
  0x20   : > { %925 = vmatprep.mubr.msk.f32.mxu0 %vm237_vm1, %v207_v11  ;;  %949 = vmatprep.mubr.msk.f32.mxu1 %vm237_vm1, %v223_v13 }
  0x23   : > { %926 = vmatmul.mubr.msk.f32.gmra.mrb[4].mxu0 %vm237_vm1, %v208_v14  ;;  %950 = vmatmul.mubr.msk.f32.gmra.mrb[4].mxu1 %vm237_vm1, %v224_v16 }
  0x24   : > { %928 = vmatprep.mubr.msk.f32.mxu0 %vm237_vm1, %v209_v15  ;;  %952 = vmatprep.mubr.msk.f32.mxu1 %vm237_vm1, %v225_v17 }
  0x27   : > { %929 = vmatmul.mubr.msk.f32.gmra.mrb[6].mxu0 %vm237_vm1, %v210_v18  ;;  %953 = vmatmul.mubr.msk.f32.gmra.mrb[6].mxu1 %vm237_vm1, %v226_v20 }
  0x28   : > { %931 = vmatprep.mubr.msk.f32.mxu0 %vm237_vm1, %v211_v19  ;;  %955 = vmatprep.mubr.msk.f32.mxu1 %vm237_vm1, %v227_v21 }
  0x2b   : > { %932 = vmatmul.mubr.msk.f32.gmra.mrb[8].mxu0 %vm237_vm1, %v212_v22  ;;  %956 = vmatmul.mubr.msk.f32.gmra.mrb[8].mxu1 %vm237_vm1, %v228_v24 }
  0x2c   : > { %934 = vmatprep.mubr.msk.f32.mxu0 %vm237_vm1, %v213_v23  ;;  %958 = vmatprep.mubr.msk.f32.mxu1 %vm237_vm1, %v229_v25 }
  0x2f   : > { %935 = vmatmul.mubr.msk.f32.gmra.mrb[10].mxu0 %vm237_vm1, %v214_v26  ;;  %959 = vmatmul.mubr.msk.f32.gmra.mrb[10].mxu1 %vm237_vm1, %v230_v28 }
  0x30   : > { %937 = vmatprep.mubr.msk.f32.mxu0 %vm237_vm1, %v215_v27  ;;  %961 = vmatprep.mubr.msk.f32.mxu1 %vm237_vm1, %v231_v29 }
  0x33   : > { %938 = vmatmul.mubr.msk.f32.gmra.mrb[12].mxu0 %vm237_vm1, %v216_v30  ;;  %962 = vmatmul.mubr.msk.f32.gmra.mrb[12].mxu1 %vm237_vm1, %v232_v32 }
  0x34   : > { %940 = vmatprep.mubr.msk.f32.mxu0 %vm237_vm1, %v217_v31  ;;  %964 = vmatprep.mubr.msk.f32.mxu1 %vm237_vm1, %v233_v33 }
  0x37   : > { %941 = vmatmul.mubr.msk.f32.gmra.mrb[14].mxu0 %vm237_vm1, %v218_v34  ;;  %965 = vmatmul.mubr.msk.f32.gmra.mrb[14].mxu1 %vm237_vm1, %v234_v35 }
  0xee   : > { %v921_v36 = vpop.f32.mrb[0].mxu0  ;;  %v1113_v40 = vpop.f32.mrb[0].mxu1 }
  0xef   : > { %561 = vst.msk [vmem:[%s1032_s24 + $0x8] sm:$0xff] %vm559_vm2, %v921_v36  ;;  %v594_v37 = vsel %vm559_vm2, %v921_v36, 0.0  ;;  %v667_v38 = vmul.f32 %v921_v36, %v921_v36  ;;  %v400_v39 = vpop.f32.mrb[1].mxu0  ;;  %577 = vst.msk [vmem:[%s1032_s24 + $0x88] sm:$0xff] %vm559_vm2, %v1113_v40  ;;  %v1121_v43 = vpop.f32.mrb[1].mxu1 }
  0xf0   : > { %560 = vst.msk [vmem:[%s1032_s24] sm:$0xff] %vm559_vm2, %v400_v39  ;;  %v593_v41 = vsel %vm559_vm2, %v400_v39, 0.0  ;;  %v666_v42 = vmul.f32 %v400_v39, %v400_v39  ;;  %576 = vst.msk [vmem:[%s1032_s24 + $0x80] sm:$0xff] %vm559_vm2, %v1121_v43 }
  0xf1   : > { %v699_v44 = vsel %vm559_vm2, %v667_v38, 0.0  ;;  %v595_v45 = vadd.f32 %v594_v37, %v593_v41 }
  0xf2   : > { %v698_v46 = vsel %vm559_vm2, %v666_v42, 0.0  ;;  %v924_v47 = vpop.f32.mrb[2].mxu0  ;;  %v1130_v50 = vpop.f32.mrb[2].mxu1 }
  0xf3   : > { %v700_v48 = vadd.f32 %v699_v44, %v698_v46  ;;  %563 = vst.msk [vmem:[%s1032_s24 + $0x18] sm:$0xff] %vm559_vm2, %v924_v47  ;;  %v410_v49 = vpop.f32.mrb[3].mxu0  ;;  %v669_v51 = vmul.f32 %v924_v47, %v924_v47  ;;  %579 = vst.msk [vmem:[%s1032_s24 + $0x98] sm:$0xff] %vm559_vm2, %v1130_v50  ;;  %v1138_v54 = vpop.f32.mrb[3].mxu1  ;;  %v598_v56 = vsel %vm559_vm2, %v924_v47, 0.0 }
  0xf4   : > { %562 = vst.msk [vmem:[%s1032_s24 + $0x10] sm:$0xff] %vm559_vm2, %v410_v49  ;;  %v596_v52 = vsel %vm559_vm2, %v410_v49, 0.0  ;;  %v668_v53 = vmul.f32 %v410_v49, %v410_v49  ;;  %578 = vst.msk [vmem:[%s1032_s24 + $0x90] sm:$0xff] %vm559_vm2, %v1138_v54 }
  0xf5   : > { %v597_v55 = vadd.f32 %v596_v52, %v595_v45  ;;  %v703_v63 = vsel %vm559_vm2, %v669_v51, 0.0 }
  0xf6   : > { %v701_v57 = vsel %vm559_vm2, %v668_v53, 0.0  ;;  %v927_v58 = vpop.f32.mrb[4].mxu0  ;;  %v1147_v62 = vpop.f32.mrb[4].mxu1 }
  0xf7   : > { %v702_v59 = vadd.f32 %v701_v57, %v700_v48  ;;  %565 = vst.msk [vmem:[%s1032_s24 + $0x28] sm:$0xff] %vm559_vm2, %v927_v58  ;;  %v420_v60 = vpop.f32.mrb[5].mxu0  ;;  %v599_v61 = vadd.f32 %v598_v56, %v597_v55  ;;  %v671_v0 = vmul.f32 %v927_v58, %v927_v58  ;;  %581 = vst.msk [vmem:[%s1032_s24 + $0xa8] sm:$0xff] %vm559_vm2, %v1147_v62  ;;  %v1156_v3 = vpop.f32.mrb[5].mxu1  ;;  %v602_v6 = vsel %vm559_vm2, %v927_v58, 0.0 }
  0xf8   : > { %564 = vst.msk [vmem:[%s1032_s24 + $0x20] sm:$0xff] %vm559_vm2, %v420_v60  ;;  %v600_v1 = vsel %vm559_vm2, %v420_v60, 0.0  ;;  %v670_v2 = vmul.f32 %v420_v60, %v420_v60  ;;  %580 = vst.msk [vmem:[%s1032_s24 + $0xa0] sm:$0xff] %vm559_vm2, %v1156_v3 }
  0xf9   : > { %v601_v4 = vadd.f32 %v600_v1, %v599_v61  ;;  %v704_v5 = vadd.f32 %v703_v63, %v702_v59  ;;  %v707_v13 = vsel %vm559_vm2, %v671_v0, 0.0 }
  0xfa   : > { %v705_v7 = vsel %vm559_vm2, %v670_v2, 0.0  ;;  %v930_v8 = vpop.f32.mrb[6].mxu0  ;;  %v1165_v12 = vpop.f32.mrb[6].mxu1 }
  0xfb   : > { %v706_v9 = vadd.f32 %v705_v7, %v704_v5  ;;  %567 = vst.msk [vmem:[%s1032_s24 + $0x38] sm:$0xff] %vm559_vm2, %v930_v8  ;;  %v430_v10 = vpop.f32.mrb[7].mxu0  ;;  %v603_v11 = vadd.f32 %v602_v6, %v601_v4  ;;  %v673_v14 = vmul.f32 %v930_v8, %v930_v8  ;;  %583 = vst.msk [vmem:[%s1032_s24 + $0xb8] sm:$0xff] %vm559_vm2, %v1165_v12  ;;  %v1174_v17 = vpop.f32.mrb[7].mxu1  ;;  %v606_v20 = vsel %vm559_vm2, %v930_v8, 0.0 }
  0xfc   : > { %566 = vst.msk [vmem:[%s1032_s24 + $0x30] sm:$0xff] %vm559_vm2, %v430_v10  ;;  %v604_v15 = vsel %vm559_vm2, %v430_v10, 0.0  ;;  %v672_v16 = vmul.f32 %v430_v10, %v430_v10  ;;  %582 = vst.msk [vmem:[%s1032_s24 + $0xb0] sm:$0xff] %vm559_vm2, %v1174_v17  ;;  %v682_v10 = vmul.f32 %v1121_v43, %v1121_v43 }
  0xfd   : > { %v605_v18 = vadd.f32 %v604_v15, %v603_v11  ;;  %v708_v19 = vadd.f32 %v707_v13, %v706_v9  ;;  %v711_v27 = vsel %vm559_vm2, %v673_v14, 0.0 }
  0xfe   : > { %v709_v21 = vsel %vm559_vm2, %v672_v16, 0.0  ;;  %v933_v22 = vpop.f32.mrb[8].mxu0  ;;  %v1183_v26 = vpop.f32.mrb[8].mxu1 }
  0xff   : > { %v710_v23 = vadd.f32 %v709_v21, %v708_v19  ;;  %569 = vst.msk [vmem:[%s1032_s24 + $0x48] sm:$0xff] %vm559_vm2, %v933_v22  ;;  %v440_v24 = vpop.f32.mrb[9].mxu0  ;;  %v607_v25 = vadd.f32 %v606_v20, %v605_v18  ;;  %v675_v28 = vmul.f32 %v933_v22, %v933_v22  ;;  %585 = vst.msk [vmem:[%s1032_s24 + $0xc8] sm:$0xff] %vm559_vm2, %v1183_v26  ;;  %v1192_v31 = vpop.f32.mrb[9].mxu1  ;;  %v610_v34 = vsel %vm559_vm2, %v933_v22, 0.0 }
 0x100   : > { %568 = vst.msk [vmem:[%s1032_s24 + $0x40] sm:$0xff] %vm559_vm2, %v440_v24  ;;  %v608_v29 = vsel %vm559_vm2, %v440_v24, 0.0  ;;  %v674_v30 = vmul.f32 %v440_v24, %v440_v24  ;;  %584 = vst.msk [vmem:[%s1032_s24 + $0xc0] sm:$0xff] %vm559_vm2, %v1192_v31 }
 0x101   : > { %v609_v32 = vadd.f32 %v608_v29, %v607_v25  ;;  %v712_v33 = vadd.f32 %v711_v27, %v710_v23  ;;  %v715_v42 = vsel %vm559_vm2, %v675_v28, 0.0  ;;  %v624_v23 = vsel %vm559_vm2, %v1121_v43, 0.0 }
 0x102   : > { %v713_v35 = vsel %vm559_vm2, %v674_v30, 0.0  ;;  %v936_v36 = vpop.f32.mrb[10].mxu0  ;;  %v1201_v41 = vpop.f32.mrb[10].mxu1  ;;  %v683_v28 = vmul.f32 %v1113_v40, %v1113_v40  ;;  %v729_v30 = vsel %vm559_vm2, %v682_v10, 0.0  ;;  %v691_v10 = vmul.f32 %v1183_v26, %v1183_v26 }
 0x103   : > { %v714_v37 = vadd.f32 %v713_v35, %v712_v33  ;;  %571 = vst.msk [vmem:[%s1032_s24 + $0x58] sm:$0xff] %vm559_vm2, %v936_v36  ;;  %v450_v38 = vpop.f32.mrb[11].mxu0  ;;  %v611_v39 = vadd.f32 %v610_v34, %v609_v32  ;;  %v677_v44 = vmul.f32 %v936_v36, %v936_v36  ;;  %587 = vst.msk [vmem:[%s1032_s24 + $0xd8] sm:$0xff] %vm559_vm2, %v1201_v41  ;;  %v1210_v47 = vpop.f32.mrb[11].mxu1  ;;  %v614_v51 = vsel %vm559_vm2, %v936_v36, 0.0 }
 0x104   : > { %570 = vst.msk [vmem:[%s1032_s24 + $0x50] sm:$0xff] %vm559_vm2, %v450_v38  ;;  %v612_v45 = vsel %vm559_vm2, %v450_v38, 0.0  ;;  %v676_v46 = vmul.f32 %v450_v38, %v450_v38  ;;  %586 = vst.msk [vmem:[%s1032_s24 + $0xd0] sm:$0xff] %vm559_vm2, %v1210_v47  ;;  %v684_v32 = vmul.f32 %v1138_v54, %v1138_v54  ;;  %v626_v35 = vsel %vm559_vm2, %v1113_v40, 0.0 }
 0x105   : > { %v613_v48 = vadd.f32 %v612_v45, %v611_v39  ;;  %v716_v49 = vadd.f32 %v715_v42, %v714_v37  ;;  %v719_v59 = vsel %vm559_vm2, %v677_v44, 0.0  ;;  %v628_v36 = vsel %vm559_vm2, %v1138_v54, 0.0 }
 0x106   : > { %v717_v52 = vsel %vm559_vm2, %v676_v46, 0.0  ;;  %v939_v53 = vpop.f32.mrb[12].mxu0  ;;  %v1219_v58 = vpop.f32.mrb[12].mxu1  ;;  %v731_v39 = vsel %vm559_vm2, %v683_v28, 0.0  ;;  %v685_v42 = vmul.f32 %v1130_v50, %v1130_v50  ;;  %v733_v44 = vsel %vm559_vm2, %v684_v32, 0.0 }
 0x107   : > { %v718_v55 = vadd.f32 %v717_v52, %v716_v49  ;;  %573 = vst.msk [vmem:[%s1032_s24 + $0x68] sm:$0xff] %vm559_vm2, %v939_v53  ;;  %v460_v56 = vpop.f32.mrb[13].mxu0  ;;  %v615_v57 = vadd.f32 %v614_v51, %v613_v48  ;;  %v679_v60 = vmul.f32 %v939_v53, %v939_v53  ;;  %589 = vst.msk [vmem:[%s1032_s24 + $0xe8] sm:$0xff] %vm559_vm2, %v1219_v58  ;;  %v1228_v0 = vpop.f32.mrb[13].mxu1  ;;  %v618_v4 = vsel %vm559_vm2, %v939_v53, 0.0 }
 0x108   : > { %572 = vst.msk [vmem:[%s1032_s24 + $0x60] sm:$0xff] %vm559_vm2, %v460_v56  ;;  %v616_v61 = vsel %vm559_vm2, %v460_v56, 0.0  ;;  %v678_v63 = vmul.f32 %v460_v56, %v460_v56  ;;  %588 = vst.msk [vmem:[%s1032_s24 + $0xe0] sm:$0xff] %vm559_vm2, %v1228_v0  ;;  %v686_v45 = vmul.f32 %v1156_v3, %v1156_v3  ;;  %v630_v40 = vsel %vm559_vm2, %v1130_v50, 0.0 }
 0x109   : > { %v617_v1 = vadd.f32 %v616_v61, %v615_v57  ;;  %v720_v2 = vadd.f32 %v719_v59, %v718_v55  ;;  %v723_v13 = vsel %vm559_vm2, %v679_v60, 0.0  ;;  %v632_v54 = vsel %vm559_vm2, %v1156_v3, 0.0 }
 0x10a   : > { %v721_v5 = vsel %vm559_vm2, %v678_v63, 0.0  ;;  %v942_v6 = vpop.f32.mrb[14].mxu0  ;;  %v1239_v11 = vpop.f32.mrb[14].mxu1  ;;  %v735_v52 = vsel %vm559_vm2, %v685_v42, 0.0  ;;  %v687_v53 = vmul.f32 %v1147_v62, %v1147_v62  ;;  %v737_v55 = vsel %vm559_vm2, %v686_v45, 0.0 }
 0x10b   : > { %v722_v7 = vadd.f32 %v721_v5, %v720_v2  ;;  %575 = vst.msk [vmem:[%s1032_s24 + $0x78] sm:$0xff] %vm559_vm2, %v942_v6  ;;  %v470_v8 = vpop.f32.mrb[15].mxu0  ;;  %v619_v9 = vadd.f32 %v618_v4, %v617_v1  ;;  %v681_v14 = vmul.f32 %v942_v6, %v942_v6  ;;  %591 = vst.msk [vmem:[%s1032_s24 + $0xf8] sm:$0xff] %vm559_vm2, %v1239_v11  ;;  %v1248_v18 = vpop.f32.mrb[15].mxu1  ;;  %v622_v21 = vsel %vm559_vm2, %v942_v6, 0.0 }
 0x10c   : > { %574 = vst.msk [vmem:[%s1032_s24 + $0x70] sm:$0xff] %vm559_vm2, %v470_v8  ;;  %v620_v15 = vsel %vm559_vm2, %v470_v8, 0.0  ;;  %v680_v16 = vmul.f32 %v470_v8, %v470_v8  ;;  %590 = vst.msk [vmem:[%s1032_s24 + $0xf0] sm:$0xff] %vm559_vm2, %v1248_v18  ;;  %v697_v24 = vmul.f32 %v1239_v11, %v1239_v11  ;;  %v688_v56 = vmul.f32 %v1174_v17, %v1174_v17 }
 0x10d   : > { %v621_v19 = vadd.f32 %v620_v15, %v619_v9  ;;  %v724_v20 = vadd.f32 %v723_v13, %v722_v7  ;;  %v727_v29 = vsel %vm559_vm2, %v681_v14, 0.0  ;;  %v634_v50 = vsel %vm559_vm2, %v1147_v62, 0.0 }
 0x10e   : > { %v725_v22 = vsel %vm559_vm2, %v680_v16, 0.0  ;;  %v1266_v33 = vsel %vm559_vm2, %v697_v24, 0.0  ;;  %v636_v3 = vsel %vm559_vm2, %v1174_v17, 0.0  ;;  %v739_v63 = vsel %vm559_vm2, %v687_v53, 0.0 }
 0x10f   : > { %v623_v25 = vadd.f32 %v622_v21, %v621_v19  ;;  %v726_v27 = vadd.f32 %v725_v22, %v724_v20  ;;  %v689_v1 = vmul.f32 %v1165_v12, %v1165_v12  ;;  %v741_v2 = vsel %vm559_vm2, %v688_v56, 0.0 }
 0x110   : > { %v690_v4 = vmul.f32 %v1192_v31, %v1192_v31  ;;  %v638_v62 = vsel %vm559_vm2, %v1165_v12, 0.0  ;;  %v640_v17 = vsel %vm559_vm2, %v1192_v31, 0.0  ;;  %v692_v14 = vmul.f32 %v1210_v47, %v1210_v47 }
 0x111   : > { %v728_v34 = vadd.f32 %v727_v29, %v726_v27  ;;  %v625_v43 = vadd.f32 %v624_v23, %v623_v25  ;;  %v743_v9 = vsel %vm559_vm2, %v689_v1, 0.0  ;;  %v642_v12 = vsel %vm559_vm2, %v1183_v26, 0.0 }
 0x112   : > { %v745_v13 = vsel %vm559_vm2, %v690_v4, 0.0  ;;  %v644_v31 = vsel %vm559_vm2, %v1210_v47, 0.0  ;;  %v747_v21 = vsel %vm559_vm2, %v691_v10, 0.0  ;;  %v693_v22 = vmul.f32 %v1201_v41, %v1201_v41 }
 0x113   : > { %v730_v37 = vadd.f32 %v729_v30, %v728_v34  ;;  %v627_v38 = vadd.f32 %v626_v35, %v625_v43  ;;  %v749_v23 = vsel %vm559_vm2, %v692_v14, 0.0  ;;  %v694_v24 = vmul.f32 %v1228_v0, %v1228_v0 }
 0x114   : > { %v646_v26 = vsel %vm559_vm2, %v1201_v41, 0.0  ;;  %v648_v47 = vsel %vm559_vm2, %v1228_v0, 0.0  ;;  %v751_v30 = vsel %vm559_vm2, %v693_v22, 0.0  ;;  %v695_v32 = vmul.f32 %v1219_v58, %v1219_v58 }
 0x115   : > { %v629_v46 = vadd.f32 %v628_v36, %v627_v38  ;;  %v732_v48 = vadd.f32 %v731_v39, %v730_v37  ;;  %v753_v34 = vsel %vm559_vm2, %v694_v24, 0.0  ;;  %v696_v43 = vmul.f32 %v1248_v18, %v1248_v18 }
 0x116   : > { %v650_v41 = vsel %vm559_vm2, %v1219_v58, 0.0  ;;  %v652_v0 = vsel %vm559_vm2, %v1248_v18, 0.0  ;;  %v755_v39 = vsel %vm559_vm2, %v695_v32, 0.0 }
 0x117   : > { %v734_v49 = vadd.f32 %v733_v44, %v732_v48  ;;  %v631_v51 = vadd.f32 %v630_v40, %v629_v46  ;;  %v757_v42 = vsel %vm559_vm2, %v696_v43, 0.0  ;;  %v654_v46 = vsel %vm559_vm2, %v1239_v11, 0.0  ;;  %v665_v11 = vld [vmem:[%s1356_s4] sm:$0x1] }
 0x119   : > { %v633_v57 = vadd.f32 %v632_v54, %v631_v51  ;;  %v736_v59 = vadd.f32 %v735_v52, %v734_v49 }
 0x11b   : > { %v738_v60 = vadd.f32 %v737_v55, %v736_v59  ;;  %v635_v61 = vadd.f32 %v634_v50, %v633_v57  ;;  %v592_v59 = vld [vmem:[%s1355_s3] sm:$0x1] }
 0x11d   : > { %v637_v5 = vadd.f32 %v636_v3, %v635_v61  ;;  %v740_v6 = vadd.f32 %v739_v63, %v738_v60 }
 0x11f   : > { %v742_v7 = vadd.f32 %v741_v2, %v740_v6  ;;  %v639_v8 = vadd.f32 %v638_v62, %v637_v5 }
 0x121   : > { %v641_v15 = vadd.f32 %v640_v17, %v639_v8  ;;  %v744_v16 = vadd.f32 %v743_v9, %v742_v7 }
 0x123   : > { %v746_v19 = vadd.f32 %v745_v13, %v744_v16  ;;  %v643_v20 = vadd.f32 %v642_v12, %v641_v15 }
 0x125   : > { %v645_v25 = vadd.f32 %v644_v31, %v643_v20  ;;  %v748_v27 = vadd.f32 %v747_v21, %v746_v19 }
 0x127   : > { %v750_v28 = vadd.f32 %v749_v23, %v748_v27  ;;  %v647_v29 = vadd.f32 %v646_v26, %v645_v25 }
 0x129   : > { %v649_v35 = vadd.f32 %v648_v47, %v647_v29  ;;  %v752_v36 = vadd.f32 %v751_v30, %v750_v28 }
 0x12b   : > { %v754_v37 = vadd.f32 %v753_v34, %v752_v36  ;;  %v651_v38 = vadd.f32 %v650_v41, %v649_v35 }
 0x12d   : > { %v653_v44 = vadd.f32 %v652_v0, %v651_v38  ;;  %v756_v45 = vadd.f32 %v755_v39, %v754_v37 }
 0x12f   : > { %v655_v48 = vadd.f32 %v654_v46, %v653_v44  ;;  %v758_v40 = vadd.f32 %v757_v42, %v756_v45 }
 0x131   : > { %v656_v54 = vrot.slane %v655_v48, 4  ;;  %v760_v49 = vadd.f32 %v1266_v33, %v758_v40 }
 0x133   : > { %v657_v58 = vadd.f32 %v656_v54, %v655_v48  ;;  %v761_v51 = vrot.slane %v760_v49, 4 }
 0x135   : > { %v658_v52 = vrot.slane %v657_v58, 2  ;;  %v762_v18 = vadd.f32 %v761_v51, %v760_v49 }
 0x137   : > { %v659_v53 = vadd.f32 %v658_v52, %v657_v58  ;;  %v763_v55 = vrot.slane %v762_v18, 2 }
 0x139   : > { %v660_v56 = vrot.slane %v659_v53, 1  ;;  %v764_v57 = vadd.f32 %v763_v55, %v762_v18 }
 0x13b   : > { %v661_v50 = vadd.f32 %v660_v56, %v659_v53  ;;  %v765_v3 = vrot.slane %v764_v57, 1 }
 0x13d   : > { %v662_v33 = vadd.f32 %v661_v50, %v592_v59  ;;  %v766_v60 = vadd.f32 %v765_v3, %v764_v57 }
 0x13f   : > { %664 = vst.msk [vmem:[%s1355_s3] sm:$0x1] %vm663_vm3, %v662_v33  ;;  %v767_v61 = vadd.f32 %v766_v60, %v665_v11 }
 0x141   : > { %768 = vst.msk [vmem:[%s1356_s4] sm:$0x1] %vm663_vm3, %v767_v61 }
 0x142 PF: > { %s15_s15 = sadd.s32 1, %s988_s15  }
 0x143   : > { %p12_p5 = scmp.ge.s32.totalorder %s15_s15, 4  }
 0x145   :  { %14 = sbr.rel (!%p12_p5) target bundleno = 1 (0x1), region = 78 }

// kernel: decoder_block_forward.7
= control target key start
LH: loop header
LB: loop body
LE: loop exit
PB: predicated region body
PF: predicated region fallthrough
CT: control target
= control target key end

     0   :  { %s1015_s15 = smov 0   ;;  %s1348_s0 = inlined_call_operand.vmem [shape: f32[512,16], index: 0, kind: input, shape index: {}]   ;;  %s1349_s1 = inlined_call_operand.vmem [shape: f32[16,16], index: 1, kind: input, shape index: {}]   ;;  %s1350_s2 = inlined_call_operand.vmem [shape: f32[512,16], index: 2, kind: output, shape index: {0}]   ;;  %s1351_s3 = inlined_call_operand.vmem [shape: f32[1,16], index: 3, kind: output, shape index: {1}]   ;;  %s1352_s4 = inlined_call_operand.vmem [shape: f32[1,16], index: 4, kind: output, shape index: {2}]  }
   0x1 LB: > { %s836_s16 = sadd.s32 4294967295, %s987_s15   ;;  %p840_p0 = scmp.ge.s32.totalorder %s987_s15, 1  ;;  %s987_s15 = sphi %s1015_s15, %s15_s15  }
   0x2   : > { %p158_p1 = scmp.lt.s32.totalorder %s987_s15, 3 }
   0x4   : > { %p159_p2 = pnand %p840_p0, %p158_p1 }
   0x5   : > { %s841_s17 = sshll.u32 (!%p159_p2), %s836_s16, 5  ;;  %p845_p4 = scmp.ne.s32.totalorder (!%p159_p2), %s836_s16, 0 }
   0x6   : > { %162 = sbr.rel (%p159_p2) target bundleno = 322 (0x142), region = 28  ;;  %p185_p3 = scmp.lt.s32.totalorder (!%p159_p2), %s841_s17, 63 }
   0xd   : > { %s1354_s17 = smov (!%p185_p3, %s841_s17), 63  ;;  %199 = sbr.rel (%p845_p4) target bundleno = 20 (0x14), region = 32 }
   0xe   : > { %s842_s18 = sshll.u32 %s1354_s17, 3  ;;  %vm200_vm0 = vcmask (!%p845_p4), 122880   ;;  %v989_v0 = vmov (!%p845_p4), 0.0  }
   0xf   : > { %s1026_s21 = scalar_lea.vmem %s1348_s0, %s842_s18  ;;  %s1031_s24 = scalar_lea.vmem %s1350_s2, %s842_s18  ;;  %201 = vst.msk [vmem:[%s1351_s3] sm:$0x1] (!%p845_p4), %vm200_vm0, %v989_v0  ;;  %202 = vst.msk [vmem:[%s1352_s4] sm:$0x1] (!%p845_p4), %vm200_vm0, %v989_v0 }
  0x14 PF: > { %v235_v1 = vld [vmem:[%s1349_s1] sm:$0xff]  ;;  %v236_v2 = vld [vmem:[%s1349_s1 + $0x8] sm:$0xff]  ;;  %vm237_vm1 = vcmask 130048   ;;  %v205_v6 = vld [vmem:[%s1026_s21 + $0x10] sm:$0xff]  ;;  %vm662_vm2 = vcmask 122880  }
  0x15   : > { %v203_v3 = vld [vmem:[%s1026_s21] sm:$0xff]  ;;  %v966_v4 = vpack.c.bf16 %v236_v2, %v235_v1  ;;  %v204_v5 = vld [vmem:[%s1026_s21 + $0x8] sm:$0xff]  ;;  %v221_v9 = vld [vmem:[%s1026_s21 + $0x90] sm:$0xff] }
  0x16   : > { %918 = vmatprep.mubr.msk.f32.mxu0 %vm237_vm1, %v203_v3  ;;  %v219_v7 = vld [vmem:[%s1026_s21 + $0x80] sm:$0xff]  ;;  %v220_v8 = vld [vmem:[%s1026_s21 + $0x88] sm:$0xff]  ;;  %v206_v10 = vld [vmem:[%s1026_s21 + $0x18] sm:$0xff] }
  0x17   : > { %967 = vmatprep.subr.bf16.mxu0 %v966_v4  ;;  %970 = vmatprep.subr.bf16.mxu1 %v966_v4  ;;  %v207_v11 = vld [vmem:[%s1026_s21 + $0x20] sm:$0xff]  ;;  %v222_v12 = vld [vmem:[%s1026_s21 + $0x98] sm:$0xff]  ;;  %v208_v14 = vld [vmem:[%s1026_s21 + $0x28] sm:$0xff] }
  0x18   : > { %969 = vmatpush3.bf16.msra.mxu0 %v966_v4  ;;  %971 = vmatpush3.bf16.msra.mxu1 %v966_v4  ;;  %v223_v13 = vld [vmem:[%s1026_s21 + $0xa0] sm:$0xff]  ;;  %v209_v15 = vld [vmem:[%s1026_s21 + $0x30] sm:$0xff]  ;;  %v224_v16 = vld [vmem:[%s1026_s21 + $0xa8] sm:$0xff] }
  0x19   : > { %942 = vmatprep.mubr.msk.f32.mxu1 %vm237_vm1, %v219_v7  ;;  %v225_v17 = vld [vmem:[%s1026_s21 + $0xb0] sm:$0xff]  ;;  %v210_v18 = vld [vmem:[%s1026_s21 + $0x38] sm:$0xff]  ;;  %v211_v19 = vld [vmem:[%s1026_s21 + $0x40] sm:$0xff] }
  0x1a   : > { %v226_v20 = vld [vmem:[%s1026_s21 + $0xb8] sm:$0xff]  ;;  %v227_v21 = vld [vmem:[%s1026_s21 + $0xc0] sm:$0xff]  ;;  %v212_v22 = vld [vmem:[%s1026_s21 + $0x48] sm:$0xff] }
  0x1b   : > { %919 = vmatmul.mubr.msk.f32.vlgmr.msra.gmra.mrb[0].mxu0 %vm237_vm1, %v204_v5  ;;  %943 = vmatmul.mubr.msk.f32.vlgmr.msra.gmra.mrb[0].mxu1 %vm237_vm1, %v220_v8  ;;  %v213_v23 = vld [vmem:[%s1026_s21 + $0x50] sm:$0xff]  ;;  %v228_v24 = vld [vmem:[%s1026_s21 + $0xc8] sm:$0xff]  ;;  %v214_v26 = vld [vmem:[%s1026_s21 + $0x58] sm:$0xff] }
  0x1c   : > { %921 = vmatprep.mubr.msk.f32.mxu0 %vm237_vm1, %v205_v6  ;;  %945 = vmatprep.mubr.msk.f32.mxu1 %vm237_vm1, %v221_v9  ;;  %v229_v25 = vld [vmem:[%s1026_s21 + $0xd0] sm:$0xff]  ;;  %v215_v27 = vld [vmem:[%s1026_s21 + $0x60] sm:$0xff]  ;;  %v230_v28 = vld [vmem:[%s1026_s21 + $0xd8] sm:$0xff] }
  0x1d   : > { %v231_v29 = vld [vmem:[%s1026_s21 + $0xe0] sm:$0xff]  ;;  %v216_v30 = vld [vmem:[%s1026_s21 + $0x68] sm:$0xff]  ;;  %v217_v31 = vld [vmem:[%s1026_s21 + $0x70] sm:$0xff] }
  0x1e   : > { %v232_v32 = vld [vmem:[%s1026_s21 + $0xe8] sm:$0xff]  ;;  %v233_v33 = vld [vmem:[%s1026_s21 + $0xf0] sm:$0xff]  ;;  %v218_v34 = vld [vmem:[%s1026_s21 + $0x78] sm:$0xff] }
  0x1f   : > { %922 = vmatmul.mubr.msk.f32.gmra.mrb[2].mxu0 %vm237_vm1, %v206_v10  ;;  %946 = vmatmul.mubr.msk.f32.gmra.mrb[2].mxu1 %vm237_vm1, %v222_v12  ;;  %v234_v35 = vld [vmem:[%s1026_s21 + $0xf8] sm:$0xff] }
  0x20   : > { %924 = vmatprep.mubr.msk.f32.mxu0 %vm237_vm1, %v207_v11  ;;  %948 = vmatprep.mubr.msk.f32.mxu1 %vm237_vm1, %v223_v13 }
  0x23   : > { %925 = vmatmul.mubr.msk.f32.gmra.mrb[4].mxu0 %vm237_vm1, %v208_v14  ;;  %949 = vmatmul.mubr.msk.f32.gmra.mrb[4].mxu1 %vm237_vm1, %v224_v16 }
  0x24   : > { %927 = vmatprep.mubr.msk.f32.mxu0 %vm237_vm1, %v209_v15  ;;  %951 = vmatprep.mubr.msk.f32.mxu1 %vm237_vm1, %v225_v17 }
  0x27   : > { %928 = vmatmul.mubr.msk.f32.gmra.mrb[6].mxu0 %vm237_vm1, %v210_v18  ;;  %952 = vmatmul.mubr.msk.f32.gmra.mrb[6].mxu1 %vm237_vm1, %v226_v20 }
  0x28   : > { %930 = vmatprep.mubr.msk.f32.mxu0 %vm237_vm1, %v211_v19  ;;  %954 = vmatprep.mubr.msk.f32.mxu1 %vm237_vm1, %v227_v21 }
  0x2b   : > { %931 = vmatmul.mubr.msk.f32.gmra.mrb[8].mxu0 %vm237_vm1, %v212_v22  ;;  %955 = vmatmul.mubr.msk.f32.gmra.mrb[8].mxu1 %vm237_vm1, %v228_v24 }
  0x2c   : > { %933 = vmatprep.mubr.msk.f32.mxu0 %vm237_vm1, %v213_v23  ;;  %957 = vmatprep.mubr.msk.f32.mxu1 %vm237_vm1, %v229_v25 }
  0x2f   : > { %934 = vmatmul.mubr.msk.f32.gmra.mrb[10].mxu0 %vm237_vm1, %v214_v26  ;;  %958 = vmatmul.mubr.msk.f32.gmra.mrb[10].mxu1 %vm237_vm1, %v230_v28 }
  0x30   : > { %936 = vmatprep.mubr.msk.f32.mxu0 %vm237_vm1, %v215_v27  ;;  %960 = vmatprep.mubr.msk.f32.mxu1 %vm237_vm1, %v231_v29 }
  0x33   : > { %937 = vmatmul.mubr.msk.f32.gmra.mrb[12].mxu0 %vm237_vm1, %v216_v30  ;;  %961 = vmatmul.mubr.msk.f32.gmra.mrb[12].mxu1 %vm237_vm1, %v232_v32 }
  0x34   : > { %939 = vmatprep.mubr.msk.f32.mxu0 %vm237_vm1, %v217_v31  ;;  %963 = vmatprep.mubr.msk.f32.mxu1 %vm237_vm1, %v233_v33 }
  0x37   : > { %940 = vmatmul.mubr.msk.f32.gmra.mrb[14].mxu0 %vm237_vm1, %v218_v34  ;;  %964 = vmatmul.mubr.msk.f32.gmra.mrb[14].mxu1 %vm237_vm1, %v234_v35 }
  0xee   : > { %v920_v36 = vpop.f32.mrb[0].mxu0  ;;  %v1112_v40 = vpop.f32.mrb[0].mxu1 }
  0xef   : > { %560 = vst.msk [vmem:[%s1031_s24 + $0x8] sm:$0xff] %vm237_vm1, %v920_v36  ;;  %v593_v37 = vsel %vm237_vm1, %v920_v36, 0.0  ;;  %v666_v38 = vmul.f32 %v920_v36, %v920_v36  ;;  %v400_v39 = vpop.f32.mrb[1].mxu0  ;;  %576 = vst.msk [vmem:[%s1031_s24 + $0x88] sm:$0xff] %vm237_vm1, %v1112_v40  ;;  %v1120_v43 = vpop.f32.mrb[1].mxu1 }
  0xf0   : > { %559 = vst.msk [vmem:[%s1031_s24] sm:$0xff] %vm237_vm1, %v400_v39  ;;  %v592_v41 = vsel %vm237_vm1, %v400_v39, 0.0  ;;  %v665_v42 = vmul.f32 %v400_v39, %v400_v39  ;;  %575 = vst.msk [vmem:[%s1031_s24 + $0x80] sm:$0xff] %vm237_vm1, %v1120_v43 }
  0xf1   : > { %v698_v44 = vsel %vm237_vm1, %v666_v38, 0.0  ;;  %v594_v45 = vadd.f32 %v593_v37, %v592_v41 }
  0xf2   : > { %v697_v46 = vsel %vm237_vm1, %v665_v42, 0.0  ;;  %v923_v47 = vpop.f32.mrb[2].mxu0  ;;  %v1129_v50 = vpop.f32.mrb[2].mxu1 }
  0xf3   : > { %v699_v48 = vadd.f32 %v698_v44, %v697_v46  ;;  %562 = vst.msk [vmem:[%s1031_s24 + $0x18] sm:$0xff] %vm237_vm1, %v923_v47  ;;  %v410_v49 = vpop.f32.mrb[3].mxu0  ;;  %v668_v51 = vmul.f32 %v923_v47, %v923_v47  ;;  %578 = vst.msk [vmem:[%s1031_s24 + $0x98] sm:$0xff] %vm237_vm1, %v1129_v50  ;;  %v1137_v54 = vpop.f32.mrb[3].mxu1  ;;  %v597_v56 = vsel %vm237_vm1, %v923_v47, 0.0 }
  0xf4   : > { %561 = vst.msk [vmem:[%s1031_s24 + $0x10] sm:$0xff] %vm237_vm1, %v410_v49  ;;  %v595_v52 = vsel %vm237_vm1, %v410_v49, 0.0  ;;  %v667_v53 = vmul.f32 %v410_v49, %v410_v49  ;;  %577 = vst.msk [vmem:[%s1031_s24 + $0x90] sm:$0xff] %vm237_vm1, %v1137_v54 }
  0xf5   : > { %v596_v55 = vadd.f32 %v595_v52, %v594_v45  ;;  %v702_v63 = vsel %vm237_vm1, %v668_v51, 0.0 }
  0xf6   : > { %v700_v57 = vsel %vm237_vm1, %v667_v53, 0.0  ;;  %v926_v58 = vpop.f32.mrb[4].mxu0  ;;  %v1146_v62 = vpop.f32.mrb[4].mxu1 }
  0xf7   : > { %v701_v59 = vadd.f32 %v700_v57, %v699_v48  ;;  %564 = vst.msk [vmem:[%s1031_s24 + $0x28] sm:$0xff] %vm237_vm1, %v926_v58  ;;  %v420_v60 = vpop.f32.mrb[5].mxu0  ;;  %v598_v61 = vadd.f32 %v597_v56, %v596_v55  ;;  %v670_v0 = vmul.f32 %v926_v58, %v926_v58  ;;  %580 = vst.msk [vmem:[%s1031_s24 + $0xa8] sm:$0xff] %vm237_vm1, %v1146_v62  ;;  %v1155_v3 = vpop.f32.mrb[5].mxu1  ;;  %v601_v6 = vsel %vm237_vm1, %v926_v58, 0.0 }
  0xf8   : > { %563 = vst.msk [vmem:[%s1031_s24 + $0x20] sm:$0xff] %vm237_vm1, %v420_v60  ;;  %v599_v1 = vsel %vm237_vm1, %v420_v60, 0.0  ;;  %v669_v2 = vmul.f32 %v420_v60, %v420_v60  ;;  %579 = vst.msk [vmem:[%s1031_s24 + $0xa0] sm:$0xff] %vm237_vm1, %v1155_v3 }
  0xf9   : > { %v600_v4 = vadd.f32 %v599_v1, %v598_v61  ;;  %v703_v5 = vadd.f32 %v702_v63, %v701_v59  ;;  %v706_v13 = vsel %vm237_vm1, %v670_v0, 0.0 }
  0xfa   : > { %v704_v7 = vsel %vm237_vm1, %v669_v2, 0.0  ;;  %v929_v8 = vpop.f32.mrb[6].mxu0  ;;  %v1164_v12 = vpop.f32.mrb[6].mxu1 }
  0xfb   : > { %v705_v9 = vadd.f32 %v704_v7, %v703_v5  ;;  %566 = vst.msk [vmem:[%s1031_s24 + $0x38] sm:$0xff] %vm237_vm1, %v929_v8  ;;  %v430_v10 = vpop.f32.mrb[7].mxu0  ;;  %v602_v11 = vadd.f32 %v601_v6, %v600_v4  ;;  %v672_v14 = vmul.f32 %v929_v8, %v929_v8  ;;  %582 = vst.msk [vmem:[%s1031_s24 + $0xb8] sm:$0xff] %vm237_vm1, %v1164_v12  ;;  %v1173_v17 = vpop.f32.mrb[7].mxu1  ;;  %v605_v20 = vsel %vm237_vm1, %v929_v8, 0.0 }
  0xfc   : > { %565 = vst.msk [vmem:[%s1031_s24 + $0x30] sm:$0xff] %vm237_vm1, %v430_v10  ;;  %v603_v15 = vsel %vm237_vm1, %v430_v10, 0.0  ;;  %v671_v16 = vmul.f32 %v430_v10, %v430_v10  ;;  %581 = vst.msk [vmem:[%s1031_s24 + $0xb0] sm:$0xff] %vm237_vm1, %v1173_v17  ;;  %v681_v10 = vmul.f32 %v1120_v43, %v1120_v43 }
  0xfd   : > { %v604_v18 = vadd.f32 %v603_v15, %v602_v11  ;;  %v707_v19 = vadd.f32 %v706_v13, %v705_v9  ;;  %v710_v27 = vsel %vm237_vm1, %v672_v14, 0.0 }
  0xfe   : > { %v708_v21 = vsel %vm237_vm1, %v671_v16, 0.0  ;;  %v932_v22 = vpop.f32.mrb[8].mxu0  ;;  %v1182_v26 = vpop.f32.mrb[8].mxu1 }
  0xff   : > { %v709_v23 = vadd.f32 %v708_v21, %v707_v19  ;;  %568 = vst.msk [vmem:[%s1031_s24 + $0x48] sm:$0xff] %vm237_vm1, %v932_v22  ;;  %v440_v24 = vpop.f32.mrb[9].mxu0  ;;  %v606_v25 = vadd.f32 %v605_v20, %v604_v18  ;;  %v674_v28 = vmul.f32 %v932_v22, %v932_v22  ;;  %584 = vst.msk [vmem:[%s1031_s24 + $0xc8] sm:$0xff] %vm237_vm1, %v1182_v26  ;;  %v1191_v31 = vpop.f32.mrb[9].mxu1  ;;  %v609_v34 = vsel %vm237_vm1, %v932_v22, 0.0 }
 0x100   : > { %567 = vst.msk [vmem:[%s1031_s24 + $0x40] sm:$0xff] %vm237_vm1, %v440_v24  ;;  %v607_v29 = vsel %vm237_vm1, %v440_v24, 0.0  ;;  %v673_v30 = vmul.f32 %v440_v24, %v440_v24  ;;  %583 = vst.msk [vmem:[%s1031_s24 + $0xc0] sm:$0xff] %vm237_vm1, %v1191_v31 }
 0x101   : > { %v608_v32 = vadd.f32 %v607_v29, %v606_v25  ;;  %v711_v33 = vadd.f32 %v710_v27, %v709_v23  ;;  %v714_v42 = vsel %vm237_vm1, %v674_v28, 0.0  ;;  %v623_v23 = vsel %vm237_vm1, %v1120_v43, 0.0 }
 0x102   : > { %v712_v35 = vsel %vm237_vm1, %v673_v30, 0.0  ;;  %v935_v36 = vpop.f32.mrb[10].mxu0  ;;  %v1200_v41 = vpop.f32.mrb[10].mxu1  ;;  %v682_v28 = vmul.f32 %v1112_v40, %v1112_v40  ;;  %v728_v29 = vsel %vm237_vm1, %v681_v10, 0.0  ;;  %v683_v30 = vmul.f32 %v1137_v54, %v1137_v54 }
 0x103   : > { %v713_v37 = vadd.f32 %v712_v35, %v711_v33  ;;  %570 = vst.msk [vmem:[%s1031_s24 + $0x58] sm:$0xff] %vm237_vm1, %v935_v36  ;;  %v450_v38 = vpop.f32.mrb[11].mxu0  ;;  %v610_v39 = vadd.f32 %v609_v34, %v608_v32  ;;  %v676_v44 = vmul.f32 %v935_v36, %v935_v36  ;;  %586 = vst.msk [vmem:[%s1031_s24 + $0xd8] sm:$0xff] %vm237_vm1, %v1200_v41  ;;  %v1209_v47 = vpop.f32.mrb[11].mxu1  ;;  %v613_v51 = vsel %vm237_vm1, %v935_v36, 0.0 }
 0x104   : > { %569 = vst.msk [vmem:[%s1031_s24 + $0x50] sm:$0xff] %vm237_vm1, %v450_v38  ;;  %v611_v45 = vsel %vm237_vm1, %v450_v38, 0.0  ;;  %v675_v46 = vmul.f32 %v450_v38, %v450_v38  ;;  %585 = vst.msk [vmem:[%s1031_s24 + $0xd0] sm:$0xff] %vm237_vm1, %v1209_v47  ;;  %v625_v34 = vsel %vm237_vm1, %v1112_v40, 0.0  ;;  %v627_v43 = vsel %vm237_vm1, %v1137_v54, 0.0 }
 0x105   : > { %v612_v48 = vadd.f32 %v611_v45, %v610_v39  ;;  %v715_v49 = vadd.f32 %v714_v42, %v713_v37  ;;  %v718_v59 = vsel %vm237_vm1, %v676_v44, 0.0  ;;  %v730_v37 = vsel %vm237_vm1, %v682_v28, 0.0 }
 0x106   : > { %v716_v52 = vsel %vm237_vm1, %v675_v46, 0.0  ;;  %v938_v53 = vpop.f32.mrb[12].mxu0  ;;  %v1218_v58 = vpop.f32.mrb[12].mxu1  ;;  %v684_v38 = vmul.f32 %v1129_v50, %v1129_v50  ;;  %v732_v39 = vsel %vm237_vm1, %v683_v30, 0.0  ;;  %v685_v42 = vmul.f32 %v1155_v3, %v1155_v3 }
 0x107   : > { %v717_v55 = vadd.f32 %v716_v52, %v715_v49  ;;  %572 = vst.msk [vmem:[%s1031_s24 + $0x68] sm:$0xff] %vm237_vm1, %v938_v53  ;;  %v460_v56 = vpop.f32.mrb[13].mxu0  ;;  %v614_v57 = vadd.f32 %v613_v51, %v612_v48  ;;  %v678_v60 = vmul.f32 %v938_v53, %v938_v53  ;;  %588 = vst.msk [vmem:[%s1031_s24 + $0xe8] sm:$0xff] %vm237_vm1, %v1218_v58  ;;  %v1227_v0 = vpop.f32.mrb[13].mxu1  ;;  %v617_v4 = vsel %vm237_vm1, %v938_v53, 0.0 }
 0x108   : > { %571 = vst.msk [vmem:[%s1031_s24 + $0x60] sm:$0xff] %vm237_vm1, %v460_v56  ;;  %v615_v61 = vsel %vm237_vm1, %v460_v56, 0.0  ;;  %v677_v63 = vmul.f32 %v460_v56, %v460_v56  ;;  %587 = vst.msk [vmem:[%s1031_s24 + $0xe0] sm:$0xff] %vm237_vm1, %v1227_v0  ;;  %v629_v40 = vsel %vm237_vm1, %v1129_v50, 0.0  ;;  %v631_v54 = vsel %vm237_vm1, %v1155_v3, 0.0 }
 0x109   : > { %v616_v1 = vadd.f32 %v615_v61, %v614_v57  ;;  %v719_v2 = vadd.f32 %v718_v59, %v717_v55  ;;  %v722_v13 = vsel %vm237_vm1, %v678_v60, 0.0  ;;  %v734_v49 = vsel %vm237_vm1, %v684_v38, 0.0 }
 0x10a   : > { %v720_v5 = vsel %vm237_vm1, %v677_v63, 0.0  ;;  %v941_v6 = vpop.f32.mrb[14].mxu0  ;;  %v1238_v11 = vpop.f32.mrb[14].mxu1  ;;  %v686_v51 = vmul.f32 %v1146_v62, %v1146_v62  ;;  %v736_v52 = vsel %vm237_vm1, %v685_v42, 0.0  ;;  %v687_v53 = vmul.f32 %v1173_v17, %v1173_v17 }
 0x10b   : > { %v721_v7 = vadd.f32 %v720_v5, %v719_v2  ;;  %574 = vst.msk [vmem:[%s1031_s24 + $0x78] sm:$0xff] %vm237_vm1, %v941_v6  ;;  %v470_v8 = vpop.f32.mrb[15].mxu0  ;;  %v618_v9 = vadd.f32 %v617_v4, %v616_v1  ;;  %v680_v14 = vmul.f32 %v941_v6, %v941_v6  ;;  %590 = vst.msk [vmem:[%s1031_s24 + $0xf8] sm:$0xff] %vm237_vm1, %v1238_v11  ;;  %v1247_v18 = vpop.f32.mrb[15].mxu1  ;;  %v621_v21 = vsel %vm237_vm1, %v941_v6, 0.0 }
 0x10c   : > { %573 = vst.msk [vmem:[%s1031_s24 + $0x70] sm:$0xff] %vm237_vm1, %v470_v8  ;;  %v619_v15 = vsel %vm237_vm1, %v470_v8, 0.0  ;;  %v679_v16 = vmul.f32 %v470_v8, %v470_v8  ;;  %589 = vst.msk [vmem:[%s1031_s24 + $0xf0] sm:$0xff] %vm237_vm1, %v1247_v18  ;;  %v633_v50 = vsel %vm237_vm1, %v1146_v62, 0.0  ;;  %v635_v3 = vsel %vm237_vm1, %v1173_v17, 0.0 }
 0x10d   : > { %v620_v19 = vadd.f32 %v619_v15, %v618_v9  ;;  %v723_v20 = vadd.f32 %v722_v13, %v721_v7  ;;  %v726_v27 = vsel %vm237_vm1, %v680_v14, 0.0  ;;  %v738_v60 = vsel %vm237_vm1, %v686_v51, 0.0 }
 0x10e   : > { %v724_v22 = vsel %vm237_vm1, %v679_v16, 0.0  ;;  %v688_v61 = vmul.f32 %v1164_v12, %v1164_v12  ;;  %v740_v63 = vsel %vm237_vm1, %v687_v53, 0.0  ;;  %v689_v1 = vmul.f32 %v1191_v31, %v1191_v31 }
 0x10f   : > { %v622_v24 = vadd.f32 %v621_v21, %v620_v19  ;;  %v725_v25 = vadd.f32 %v724_v22, %v723_v20  ;;  %v637_v62 = vsel %vm237_vm1, %v1164_v12, 0.0  ;;  %v639_v17 = vsel %vm237_vm1, %v1191_v31, 0.0 }
 0x110   : > { %v742_v7 = vsel %vm237_vm1, %v688_v61, 0.0  ;;  %v690_v8 = vmul.f32 %v1182_v26, %v1182_v26  ;;  %v744_v9 = vsel %vm237_vm1, %v689_v1, 0.0  ;;  %v691_v10 = vmul.f32 %v1209_v47, %v1209_v47 }
 0x111   : > { %v727_v32 = vadd.f32 %v726_v27, %v725_v25  ;;  %v624_v33 = vadd.f32 %v623_v23, %v622_v24  ;;  %v641_v12 = vsel %vm237_vm1, %v1182_v26, 0.0  ;;  %v643_v31 = vsel %vm237_vm1, %v1209_v47, 0.0 }
 0x112   : > { %v746_v19 = vsel %vm237_vm1, %v690_v8, 0.0  ;;  %v692_v20 = vmul.f32 %v1200_v41, %v1200_v41  ;;  %v748_v21 = vsel %vm237_vm1, %v691_v10, 0.0  ;;  %v693_v22 = vmul.f32 %v1227_v0, %v1227_v0 }
 0x113   : > { %v729_v35 = vadd.f32 %v728_v29, %v727_v32  ;;  %v626_v36 = vadd.f32 %v625_v34, %v624_v33  ;;  %v645_v26 = vsel %vm237_vm1, %v1200_v41, 0.0  ;;  %v647_v47 = vsel %vm237_vm1, %v1227_v0, 0.0 }
 0x114   : > { %v750_v28 = vsel %vm237_vm1, %v692_v20, 0.0  ;;  %v694_v29 = vmul.f32 %v1218_v58, %v1218_v58  ;;  %v752_v30 = vsel %vm237_vm1, %v693_v22, 0.0  ;;  %v695_v32 = vmul.f32 %v1247_v18, %v1247_v18 }
 0x115   : > { %v628_v44 = vadd.f32 %v627_v43, %v626_v36  ;;  %v731_v45 = vadd.f32 %v730_v37, %v729_v35  ;;  %v649_v41 = vsel %vm237_vm1, %v1218_v58, 0.0  ;;  %v651_v0 = vsel %vm237_vm1, %v1247_v18, 0.0 }
 0x116   : > { %v754_v36 = vsel %vm237_vm1, %v694_v29, 0.0  ;;  %v696_v37 = vmul.f32 %v1238_v11, %v1238_v11  ;;  %v756_v38 = vsel %vm237_vm1, %v695_v32, 0.0 }
 0x117   : > { %v733_v46 = vadd.f32 %v732_v39, %v731_v45  ;;  %v630_v48 = vadd.f32 %v629_v40, %v628_v44  ;;  %v653_v44 = vsel %vm237_vm1, %v1238_v11, 0.0 }
 0x118   : > { %v758_v58 = vsel %vm237_vm1, %v696_v37, 0.0 }
 0x119   : > { %v632_v55 = vadd.f32 %v631_v54, %v630_v48  ;;  %v735_v56 = vadd.f32 %v734_v49, %v733_v46 }
 0x11b   : > { %v737_v57 = vadd.f32 %v736_v52, %v735_v56  ;;  %v634_v59 = vadd.f32 %v633_v50, %v632_v55  ;;  %v591_v50 = vld [vmem:[%s1351_s3] sm:$0x1] }
 0x11d   : > { %v636_v2 = vadd.f32 %v635_v3, %v634_v59  ;;  %v739_v4 = vadd.f32 %v738_v60, %v737_v57  ;;  %v664_v57 = vld [vmem:[%s1352_s4] sm:$0x1] }
 0x11f   : > { %v741_v5 = vadd.f32 %v740_v63, %v739_v4  ;;  %v638_v6 = vadd.f32 %v637_v62, %v636_v2 }
 0x121   : > { %v640_v13 = vadd.f32 %v639_v17, %v638_v6  ;;  %v743_v14 = vadd.f32 %v742_v7, %v741_v5 }
 0x123   : > { %v745_v15 = vadd.f32 %v744_v9, %v743_v14  ;;  %v642_v16 = vadd.f32 %v641_v12, %v640_v13 }
 0x125   : > { %v644_v23 = vadd.f32 %v643_v31, %v642_v16  ;;  %v747_v24 = vadd.f32 %v746_v19, %v745_v15 }
 0x127   : > { %v749_v25 = vadd.f32 %v748_v21, %v747_v24  ;;  %v646_v27 = vadd.f32 %v645_v26, %v644_v23 }
 0x129   : > { %v648_v33 = vadd.f32 %v647_v47, %v646_v27  ;;  %v751_v34 = vadd.f32 %v750_v28, %v749_v25 }
 0x12b   : > { %v753_v43 = vadd.f32 %v752_v30, %v751_v34  ;;  %v650_v35 = vadd.f32 %v649_v41, %v648_v33 }
 0x12d   : > { %v652_v39 = vadd.f32 %v651_v0, %v650_v35  ;;  %v755_v42 = vadd.f32 %v754_v36, %v753_v43 }
 0x12f   : > { %v654_v45 = vadd.f32 %v653_v44, %v652_v39  ;;  %v757_v40 = vadd.f32 %v756_v38, %v755_v42 }
 0x131   : > { %v655_v54 = vrot.slane %v654_v45, 4  ;;  %v759_v18 = vadd.f32 %v758_v58, %v757_v40 }
 0x133   : > { %v656_v46 = vadd.f32 %v655_v54, %v654_v45  ;;  %v760_v48 = vrot.slane %v759_v18, 4 }
 0x135   : > { %v657_v49 = vrot.slane %v656_v46, 2  ;;  %v761_v51 = vadd.f32 %v760_v48, %v759_v18 }
 0x137   : > { %v658_v52 = vadd.f32 %v657_v49, %v656_v46  ;;  %v762_v53 = vrot.slane %v761_v51, 2 }
 0x139   : > { %v659_v55 = vrot.slane %v658_v52, 1  ;;  %v763_v56 = vadd.f32 %v762_v53, %v761_v51 }
 0x13b   : > { %v660_v3 = vadd.f32 %v659_v55, %v658_v52  ;;  %v764_v11 = vrot.slane %v763_v56, 1 }
 0x13d   : > { %v661_v59 = vadd.f32 %v660_v3, %v591_v50  ;;  %v765_v60 = vadd.f32 %v764_v11, %v763_v56 }
 0x13f   : > { %663 = vst.msk [vmem:[%s1351_s3] sm:$0x1] %vm662_vm2, %v661_v59  ;;  %v766_v61 = vadd.f32 %v765_v60, %v664_v57 }
 0x141   : > { %767 = vst.msk [vmem:[%s1352_s4] sm:$0x1] %vm662_vm2, %v766_v61 }
 0x142 PF: > { %s15_s15 = sadd.s32 1, %s987_s15  }
 0x143   : > { %p12_p5 = scmp.ge.s32.totalorder %s15_s15, 4  }
 0x145   :  { %14 = sbr.rel (!%p12_p5) target bundleno = 1 (0x1), region = 78 }

// kernel: decoder_block_forward.9
= control target key start
LH: loop header
LB: loop body
LE: loop exit
PB: predicated region body
PF: predicated region fallthrough
CT: control target
= control target key end

     0   :  { %s454_s12 = smov 0   ;;  %s645_s0 = inlined_call_operand.vmem [shape: f32[2048,8], index: 0, kind: input, shape index: {}]   ;;  %s646_s1 = inlined_call_operand.vmem [shape: f32[1,8], index: 1, kind: input, shape index: {}]   ;;  %s647_s2 = inlined_call_operand.vmem [shape: f32[1,8], index: 2, kind: input, shape index: {}]   ;;  %s648_s3 = inlined_call_operand.vmem [shape: f32[2048,8], index: 3, kind: output, shape index: {}]  }
   0x1 LB: > { %s405_s13 = sadd.s32 4294967295, %s432_s12   ;;  %p409_p0 = scmp.ge.s32.totalorder %s432_s12, 1  ;;  %s432_s12 = sphi %s454_s12, %s13_s12  }
   0x2   : > { %p138_p1 = scmp.lt.s32.totalorder %s432_s12, 9 }
   0x4   : > { %p139_p2 = pnand %p409_p0, %p138_p1 }
   0x5   : > { %s410_s14 = sshll.u32 (!%p139_p2), %s405_s13, 5  ;;  %v465_v0 = vld [vmem:[%s646_s1] ss:$0 sm:$0xff] (!%p139_p2)  ;;  %vm316_vm0 = vcmask (!%p139_p2), 64512  }
   0x6   : > { %142 = sbr.rel (%p139_p2) target bundleno = 46 (0x2e), region = 32  ;;  %p163_p3 = scmp.lt.s32.totalorder (!%p139_p2), %s410_s14, 255  ;;  %v475_v1 = vld [vmem:[%s647_s2] ss:$0 sm:$0xff] (!%p139_p2) }
   0xd   : > { %s650_s14 = smov (!%p163_p3, %s410_s14), 255 }
   0xe   : > { %s411_s15 = sshll.u32 %s650_s14, 3 }
   0xf   : > { %s470_s20 = scalar_lea.vmem %s645_s0, %s411_s15  ;;  %s498_s25 = scalar_lea.vmem %s648_s3, %s411_s15 }
  0x10   : > { %v174_v2 = vld [vmem:[%s470_s20] sm:$0xff]  ;;  %v175_v3 = vld [vmem:[%s470_s20 + $0x8] sm:$0xff]  ;;  %v176_v4 = vld [vmem:[%s470_s20 + $0x10] sm:$0xff] }
  0x11   : > { %v213_v5 = vmul.f32 %v465_v0, %v174_v2  ;;  %v214_v6 = vmul.f32 %v465_v0, %v175_v3  ;;  %v215_v7 = vmul.f32 %v465_v0, %v176_v4  ;;  %v177_v8 = vld [vmem:[%s470_s20 + $0x18] sm:$0xff]  ;;  %v178_v9 = vld [vmem:[%s470_s20 + $0x20] sm:$0xff]  ;;  %v179_v10 = vld [vmem:[%s470_s20 + $0x28] sm:$0xff] }
  0x12   : > { %v216_v11 = vmul.f32 %v465_v0, %v177_v8  ;;  %v217_v12 = vmul.f32 %v465_v0, %v178_v9  ;;  %v218_v13 = vmul.f32 %v465_v0, %v179_v10  ;;  %v180_v14 = vld [vmem:[%s470_s20 + $0x30] sm:$0xff]  ;;  %v181_v15 = vld [vmem:[%s470_s20 + $0x38] sm:$0xff]  ;;  %v182_v24 = vld [vmem:[%s470_s20 + $0x40] sm:$0xff] }
  0x13   : > { %v252_v16 = vadd.f32 %v475_v1, %v213_v5  ;;  %v253_v17 = vadd.f32 %v475_v1, %v214_v6  ;;  %v254_v18 = vadd.f32 %v475_v1, %v215_v7  ;;  %v219_v19 = vmul.f32 %v465_v0, %v180_v14  ;;  %v183_v25 = vld [vmem:[%s470_s20 + $0x48] sm:$0xff]  ;;  %v184_v26 = vld [vmem:[%s470_s20 + $0x50] sm:$0xff]  ;;  %v185_v31 = vld [vmem:[%s470_s20 + $0x58] sm:$0xff] }
  0x14   : > { %v255_v20 = vadd.f32 %v475_v1, %v216_v11  ;;  %v256_v21 = vadd.f32 %v475_v1, %v217_v12  ;;  %v257_v22 = vadd.f32 %v475_v1, %v218_v13  ;;  %v220_v23 = vmul.f32 %v465_v0, %v181_v15  ;;  %v186_v32 = vld [vmem:[%s470_s20 + $0x60] sm:$0xff]  ;;  %v187_v33 = vld [vmem:[%s470_s20 + $0x68] sm:$0xff]  ;;  %v188_v38 = vld [vmem:[%s470_s20 + $0x70] sm:$0xff] }
  0x15   : > { %v284_v27 = vmax.f32 %v252_v16, 0.0  ;;  %v285_v28 = vmax.f32 %v253_v17, 0.0  ;;  %v286_v29 = vmax.f32 %v254_v18, 0.0  ;;  %v258_v30 = vadd.f32 %v475_v1, %v219_v19  ;;  %v189_v43 = vld [vmem:[%s470_s20 + $0x78] sm:$0xff]  ;;  %v190_v56 = vld [vmem:[%s470_s20 + $0x80] sm:$0xff]  ;;  %v191_v57 = vld [vmem:[%s470_s20 + $0x88] sm:$0xff] }
  0x16   : > { %v287_v34 = vmax.f32 %v255_v20, 0.0  ;;  %v288_v35 = vmax.f32 %v256_v21, 0.0  ;;  %v289_v36 = vmax.f32 %v257_v22, 0.0  ;;  %v259_v37 = vadd.f32 %v475_v1, %v220_v23  ;;  %v192_v58 = vld [vmem:[%s470_s20 + $0x90] sm:$0xff]  ;;  %v193_v63 = vld [vmem:[%s470_s20 + $0x98] sm:$0xff]  ;;  %v194_v2 = vld [vmem:[%s470_s20 + $0xa0] sm:$0xff] }
  0x17   : > { %317 = vst.msk [vmem:[%s498_s25] sm:$0xff] %vm316_vm0, %v284_v27  ;;  %318 = vst.msk [vmem:[%s498_s25 + $0x8] sm:$0xff] %vm316_vm0, %v285_v28  ;;  %v290_v39 = vmax.f32 %v258_v30, 0.0  ;;  %v221_v40 = vmul.f32 %v465_v0, %v182_v24  ;;  %v222_v41 = vmul.f32 %v465_v0, %v183_v25  ;;  %v223_v42 = vmul.f32 %v465_v0, %v184_v26  ;;  %v195_v3 = vld [vmem:[%s470_s20 + $0xa8] sm:$0xff]  ;;  %v196_v8 = vld [vmem:[%s470_s20 + $0xb0] sm:$0xff] }
  0x18   : > { %319 = vst.msk [vmem:[%s498_s25 + $0x10] sm:$0xff] %vm316_vm0, %v286_v29  ;;  %320 = vst.msk [vmem:[%s498_s25 + $0x18] sm:$0xff] %vm316_vm0, %v287_v34  ;;  %v291_v44 = vmax.f32 %v259_v37, 0.0  ;;  %v224_v45 = vmul.f32 %v465_v0, %v185_v31  ;;  %v225_v46 = vmul.f32 %v465_v0, %v186_v32  ;;  %v226_v47 = vmul.f32 %v465_v0, %v187_v33  ;;  %v197_v13 = vld [vmem:[%s470_s20 + $0xb8] sm:$0xff]  ;;  %v198_v26 = vld [vmem:[%s470_s20 + $0xc0] sm:$0xff] }
  0x19   : > { %321 = vst.msk [vmem:[%s498_s25 + $0x20] sm:$0xff] %vm316_vm0, %v288_v35  ;;  %322 = vst.msk [vmem:[%s498_s25 + $0x28] sm:$0xff] %vm316_vm0, %v289_v36  ;;  %v260_v48 = vadd.f32 %v475_v1, %v221_v40  ;;  %v261_v49 = vadd.f32 %v475_v1, %v222_v41  ;;  %v262_v50 = vadd.f32 %v475_v1, %v223_v42  ;;  %v199_v27 = vld [vmem:[%s470_s20 + $0xc8] sm:$0xff]  ;;  %v200_v28 = vld [vmem:[%s470_s20 + $0xd0] sm:$0xff] }
  0x1a   : > { %323 = vst.msk [vmem:[%s498_s25 + $0x30] sm:$0xff] %vm316_vm0, %v290_v39  ;;  %v227_v51 = vmul.f32 %v465_v0, %v188_v38  ;;  %324 = vst.msk [vmem:[%s498_s25 + $0x38] sm:$0xff] %vm316_vm0, %v291_v44  ;;  %v263_v52 = vadd.f32 %v475_v1, %v224_v45  ;;  %v264_v53 = vadd.f32 %v475_v1, %v225_v46  ;;  %v201_v33 = vld [vmem:[%s470_s20 + $0xd8] sm:$0xff]  ;;  %v202_v34 = vld [vmem:[%s470_s20 + $0xe0] sm:$0xff] }
  0x1b   : > { %v265_v54 = vadd.f32 %v475_v1, %v226_v47  ;;  %v228_v55 = vmul.f32 %v465_v0, %v189_v43  ;;  %v292_v59 = vmax.f32 %v260_v48, 0.0  ;;  %v293_v60 = vmax.f32 %v261_v49, 0.0  ;;  %v203_v35 = vld [vmem:[%s470_s20 + $0xe8] sm:$0xff]  ;;  %v204_v40 = vld [vmem:[%s470_s20 + $0xf0] sm:$0xff]  ;;  %v205_v45 = vld [vmem:[%s470_s20 + $0xf8] sm:$0xff] }
  0x1c   : > { %v294_v61 = vmax.f32 %v262_v50, 0.0  ;;  %v266_v62 = vadd.f32 %v475_v1, %v227_v51  ;;  %v295_v4 = vmax.f32 %v263_v52, 0.0  ;;  %v296_v5 = vmax.f32 %v264_v53, 0.0 }
  0x1d   : > { %v297_v6 = vmax.f32 %v265_v54, 0.0  ;;  %v267_v7 = vadd.f32 %v475_v1, %v228_v55  ;;  %325 = vst.msk [vmem:[%s498_s25 + $0x40] sm:$0xff] %vm316_vm0, %v292_v59  ;;  %326 = vst.msk [vmem:[%s498_s25 + $0x48] sm:$0xff] %vm316_vm0, %v293_v60  ;;  %v229_v10 = vmul.f32 %v465_v0, %v190_v56  ;;  %v230_v11 = vmul.f32 %v465_v0, %v191_v57 }
  0x1e   : > { %327 = vst.msk [vmem:[%s498_s25 + $0x50] sm:$0xff] %vm316_vm0, %v294_v61  ;;  %v298_v9 = vmax.f32 %v266_v62, 0.0  ;;  %v231_v12 = vmul.f32 %v465_v0, %v192_v58  ;;  %328 = vst.msk [vmem:[%s498_s25 + $0x58] sm:$0xff] %vm316_vm0, %v295_v4  ;;  %v232_v15 = vmul.f32 %v465_v0, %v193_v63  ;;  %v233_v16 = vmul.f32 %v465_v0, %v194_v2 }
  0x1f   : > { %329 = vst.msk [vmem:[%s498_s25 + $0x60] sm:$0xff] %vm316_vm0, %v296_v5  ;;  %330 = vst.msk [vmem:[%s498_s25 + $0x68] sm:$0xff] %vm316_vm0, %v297_v6  ;;  %v299_v14 = vmax.f32 %v267_v7, 0.0  ;;  %v234_v17 = vmul.f32 %v465_v0, %v195_v3  ;;  %v268_v18 = vadd.f32 %v475_v1, %v229_v10  ;;  %v269_v19 = vadd.f32 %v475_v1, %v230_v11 }
  0x20   : > { %331 = vst.msk [vmem:[%s498_s25 + $0x70] sm:$0xff] %vm316_vm0, %v298_v9  ;;  %v270_v20 = vadd.f32 %v475_v1, %v231_v12  ;;  %v235_v21 = vmul.f32 %v465_v0, %v196_v8  ;;  %v271_v22 = vadd.f32 %v475_v1, %v232_v15  ;;  %v272_v23 = vadd.f32 %v475_v1, %v233_v16 }
  0x21   : > { %332 = vst.msk [vmem:[%s498_s25 + $0x78] sm:$0xff] %vm316_vm0, %v299_v14  ;;  %v273_v24 = vadd.f32 %v475_v1, %v234_v17  ;;  %v236_v25 = vmul.f32 %v465_v0, %v197_v13  ;;  %v300_v29 = vmax.f32 %v268_v18, 0.0  ;;  %v301_v30 = vmax.f32 %v269_v19, 0.0 }
  0x22   : > { %v302_v31 = vmax.f32 %v270_v20, 0.0  ;;  %v274_v32 = vadd.f32 %v475_v1, %v235_v21  ;;  %v303_v36 = vmax.f32 %v271_v22, 0.0  ;;  %v304_v37 = vmax.f32 %v272_v23, 0.0 }
  0x23   : > { %v305_v38 = vmax.f32 %v273_v24, 0.0  ;;  %v275_v39 = vadd.f32 %v475_v1, %v236_v25  ;;  %333 = vst.msk [vmem:[%s498_s25 + $0x80] sm:$0xff] %vm316_vm0, %v300_v29  ;;  %334 = vst.msk [vmem:[%s498_s25 + $0x88] sm:$0xff] %vm316_vm0, %v301_v30  ;;  %v237_v42 = vmul.f32 %v465_v0, %v198_v26  ;;  %v238_v43 = vmul.f32 %v465_v0, %v199_v27 }
  0x24   : > { %335 = vst.msk [vmem:[%s498_s25 + $0x90] sm:$0xff] %vm316_vm0, %v302_v31  ;;  %v306_v41 = vmax.f32 %v274_v32, 0.0  ;;  %v239_v44 = vmul.f32 %v465_v0, %v200_v28  ;;  %336 = vst.msk [vmem:[%s498_s25 + $0x98] sm:$0xff] %vm316_vm0, %v303_v36  ;;  %v240_v47 = vmul.f32 %v465_v0, %v201_v33  ;;  %v241_v48 = vmul.f32 %v465_v0, %v202_v34 }
  0x25   : > { %337 = vst.msk [vmem:[%s498_s25 + $0xa0] sm:$0xff] %vm316_vm0, %v304_v37  ;;  %338 = vst.msk [vmem:[%s498_s25 + $0xa8] sm:$0xff] %vm316_vm0, %v305_v38  ;;  %v307_v46 = vmax.f32 %v275_v39, 0.0  ;;  %v242_v49 = vmul.f32 %v465_v0, %v203_v35  ;;  %v276_v50 = vadd.f32 %v475_v1, %v237_v42  ;;  %v277_v51 = vadd.f32 %v475_v1, %v238_v43 }
  0x26   : > { %339 = vst.msk [vmem:[%s498_s25 + $0xb0] sm:$0xff] %vm316_vm0, %v306_v41  ;;  %v278_v52 = vadd.f32 %v475_v1, %v239_v44  ;;  %v243_v53 = vmul.f32 %v465_v0, %v204_v40  ;;  %v279_v54 = vadd.f32 %v475_v1, %v240_v47  ;;  %v280_v55 = vadd.f32 %v475_v1, %v241_v48 }
  0x27   : > { %340 = vst.msk [vmem:[%s498_s25 + $0xb8] sm:$0xff] %vm316_vm0, %v307_v46  ;;  %v281_v56 = vadd.f32 %v475_v1, %v242_v49  ;;  %v244_v57 = vmul.f32 %v465_v0, %v205_v45  ;;  %v308_v58 = vmax.f32 %v276_v50, 0.0  ;;  %v309_v59 = vmax.f32 %v277_v51, 0.0 }
  0x28   : > { %v310_v60 = vmax.f32 %v278_v52, 0.0  ;;  %v282_v61 = vadd.f32 %v475_v1, %v243_v53  ;;  %v311_v62 = vmax.f32 %v279_v54, 0.0  ;;  %v312_v63 = vmax.f32 %v280_v55, 0.0 }
  0x29   : > { %v313_v2 = vmax.f32 %v281_v56, 0.0  ;;  %v283_v3 = vadd.f32 %v475_v1, %v244_v57  ;;  %341 = vst.msk [vmem:[%s498_s25 + $0xc0] sm:$0xff] %vm316_vm0, %v308_v58  ;;  %342 = vst.msk [vmem:[%s498_s25 + $0xc8] sm:$0xff] %vm316_vm0, %v309_v59 }
  0x2a   : > { %343 = vst.msk [vmem:[%s498_s25 + $0xd0] sm:$0xff] %vm316_vm0, %v310_v60  ;;  %v314_v4 = vmax.f32 %v282_v61, 0.0  ;;  %344 = vst.msk [vmem:[%s498_s25 + $0xd8] sm:$0xff] %vm316_vm0, %v311_v62 }
  0x2b   : > { %345 = vst.msk [vmem:[%s498_s25 + $0xe0] sm:$0xff] %vm316_vm0, %v312_v63  ;;  %346 = vst.msk [vmem:[%s498_s25 + $0xe8] sm:$0xff] %vm316_vm0, %v313_v2  ;;  %v315_v0 = vmax.f32 %v283_v3, 0.0 }
  0x2c   : > { %347 = vst.msk [vmem:[%s498_s25 + $0xf0] sm:$0xff] %vm316_vm0, %v314_v4 }
  0x2d   : > { %348 = vst.msk [vmem:[%s498_s25 + $0xf8] sm:$0xff] %vm316_vm0, %v315_v0 }
  0x2e PF: > { %s13_s12 = sadd.s32 1, %s432_s12  }
  0x2f   : > { %p10_p4 = scmp.ge.s32.totalorder %s13_s12, 10  }
  0x31   :  { %12 = sbr.rel (!%p10_p4) target bundleno = 1 (0x1), region = 62 }

// kernel: decoder_block_forward.8
= control target key start
LH: loop header
LB: loop body
LE: loop exit
PB: predicated region body
PF: predicated region fallthrough
CT: control target
= control target key end

     0   :  { %s1189_s21 = smov 0   ;;  %s1569_s0 = inlined_call_operand.vmem [shape: f32[2048,4], index: 0, kind: input, shape index: {}]   ;;  %s1570_s1 = inlined_call_operand.vmem [shape: f32[1,4], index: 1, kind: input, shape index: {}]   ;;  %s1571_s2 = inlined_call_operand.vmem [shape: f32[1,4], index: 2, kind: input, shape index: {}]   ;;  %s1572_s3 = inlined_call_operand.vmem [shape: f32[4,8], index: 3, kind: input, shape index: {}]   ;;  %s1573_s4 = inlined_call_operand.vmem [shape: f32[2048,8], index: 4, kind: output, shape index: {0}]   ;;  %s1574_s5 = inlined_call_operand.vmem [shape: f32[1,8], index: 5, kind: output, shape index: {1}]   ;;  %s1575_s6 = inlined_call_operand.vmem [shape: f32[1,8], index: 6, kind: output, shape index: {2}]  }
   0x1 LB: > { %s1004_s22 = sadd.s32 4294967295, %s1151_s21   ;;  %p1008_p0 = scmp.ge.s32.totalorder %s1151_s21, 1  ;;  %s1151_s21 = sphi %s1189_s21, %s17_s21  }
   0x2   : > { %p208_p1 = scmp.lt.s32.totalorder %s1151_s21, 9 }
   0x4   : > { %p209_p2 = pnand %p1008_p0, %p208_p1 }
   0x5   : > { %s1009_s23 = sshll.u32 (!%p209_p2), %s1004_s22, 5  ;;  %p1013_p4 = scmp.ne.s32.totalorder (!%p209_p2), %s1004_s22, 0 }
   0x6   : > { %212 = sbr.rel (%p209_p2) target bundleno = 325 (0x145), region = 36  ;;  %p239_p3 = scmp.lt.s32.totalorder (!%p209_p2), %s1009_s23, 255 }
   0xd   : > { %s1577_s23 = smov (!%p239_p3, %s1009_s23), 255  ;;  %253 = sbr.rel (%p1013_p4) target bundleno = 20 (0x14), region = 40 }
   0xe   : > { %s1010_s24 = sshll.u32 %s1577_s23, 3  ;;  %vm254_vm0 = vcmask (!%p1013_p4), 57344   ;;  %v1153_v0 = vmov (!%p1013_p4), 0.0  }
   0xf   : > { %s1200_s27 = scalar_lea.vmem %s1569_s0, %s1010_s24  ;;  %s1205_s30 = scalar_lea.vmem %s1573_s4, %s1010_s24  ;;  %255 = vst.msk [vmem:[%s1574_s5] sm:$0x1] (!%p1013_p4), %vm254_vm0, %v1153_v0  ;;  %256 = vst.msk [vmem:[%s1575_s6] sm:$0x1] (!%p1013_p4), %vm254_vm0, %v1153_v0 }
  0x14 PF: > { %v399_v1 = vld [vmem:[%s1572_s3] sm:$0xf]  ;;  %vm497_vm1 = vcmask 1043456   ;;  %v258_v6 = vld [vmem:[%s1200_s27 + $0x8] sm:$0xff]  ;;  %v259_v7 = vld [vmem:[%s1200_s27 + $0x10] sm:$0xff]  ;;  %vm400_vm2 = vcmask 31744  }
  0x15   : > { %v257_v2 = vld [vmem:[%s1200_s27] sm:$0xff]  ;;  %1084 = vmatprep.subr.msk.mxu0 %vm497_vm1, %v399_v1  ;;  %1134 = vmatprep.subr.msk.mxu1 %vm497_vm1, %v399_v1  ;;  %v260_v10 = vld [vmem:[%s1200_s27 + $0x18] sm:$0xff]  ;;  %v262_v12 = vld [vmem:[%s1200_s27 + $0x28] sm:$0xff]  ;;  %vm726_vm3 = vcmask 64512   ;;  %vm830_vm4 = vcmask 57344  }
  0x16   : > { %v1220_v3 = vld [vmem:[%s1570_s1] ss:$0 sm:$0xff]  ;;  %1085 = vmatpush3.msk.msra.mxu0 %vm497_vm1, %v399_v1  ;;  %1135 = vmatpush3.msk.msra.mxu1 %vm497_vm1, %v399_v1  ;;  %v263_v16 = vld [vmem:[%s1200_s27 + $0x30] sm:$0xff]  ;;  %v264_v17 = vld [vmem:[%s1200_s27 + $0x38] sm:$0xff] }
  0x17   : > { %v296_v4 = vmul.f32 %v1220_v3, %v257_v2  ;;  %v1226_v5 = vld [vmem:[%s1571_s2] ss:$0 sm:$0xff]  ;;  %v297_v8 = vmul.f32 %v1220_v3, %v258_v6  ;;  %v298_v9 = vmul.f32 %v1220_v3, %v259_v7  ;;  %v299_v14 = vmul.f32 %v1220_v3, %v260_v10  ;;  %v266_v29 = vld [vmem:[%s1200_s27 + $0x48] sm:$0xff]  ;;  %v267_v33 = vld [vmem:[%s1200_s27 + $0x50] sm:$0xff] }
  0x18   : > { %v261_v11 = vld [vmem:[%s1200_s27 + $0x20] sm:$0xff]  ;;  %v301_v20 = vmul.f32 %v1220_v3, %v262_v12  ;;  %v302_v21 = vmul.f32 %v1220_v3, %v263_v16  ;;  %v303_v25 = vmul.f32 %v1220_v3, %v264_v17  ;;  %v305_v37 = vmul.f32 %v1220_v3, %v266_v29  ;;  %v268_v38 = vld [vmem:[%s1200_s27 + $0x58] sm:$0xff]  ;;  %v274_v42 = vld [vmem:[%s1200_s27 + $0x88] sm:$0xff] }
  0x19   : > { %v335_v13 = vadd.f32 %v1226_v5, %v296_v4  ;;  %v300_v15 = vmul.f32 %v1220_v3, %v261_v11  ;;  %v336_v18 = vadd.f32 %v1226_v5, %v297_v8  ;;  %v337_v19 = vadd.f32 %v1226_v5, %v298_v9  ;;  %v265_v26 = vld [vmem:[%s1200_s27 + $0x40] sm:$0xff]  ;;  %v275_v43 = vld [vmem:[%s1200_s27 + $0x90] sm:$0xff]  ;;  %v276_v46 = vld [vmem:[%s1200_s27 + $0x98] sm:$0xff] }
  0x1a   : > { %v338_v23 = vadd.f32 %v1226_v5, %v299_v14  ;;  %v340_v31 = vadd.f32 %v1226_v5, %v301_v20  ;;  %v304_v32 = vmul.f32 %v1220_v3, %v265_v26  ;;  %v341_v35 = vadd.f32 %v1226_v5, %v302_v21  ;;  %v273_v39 = vld [vmem:[%s1200_s27 + $0x80] sm:$0xff]  ;;  %v278_v52 = vld [vmem:[%s1200_s27 + $0xa8] sm:$0xff]  ;;  %v279_v57 = vld [vmem:[%s1200_s27 + $0xb0] sm:$0xff] }
  0x1b   : > { %v367_v22 = vmax.f32 %v335_v13, 0.0  ;;  %v339_v24 = vadd.f32 %v1226_v5, %v300_v15  ;;  %v368_v27 = vmax.f32 %v336_v18, 0.0  ;;  %v369_v28 = vmax.f32 %v337_v19, 0.0  ;;  %v269_v41 = vld [vmem:[%s1200_s27 + $0x60] sm:$0xff]  ;;  %v270_v63 = vld [vmem:[%s1200_s27 + $0x68] sm:$0xff]  ;;  %v271_v0 = vld [vmem:[%s1200_s27 + $0x70] sm:$0xff] }
  0x1c   : > { %v370_v30 = vmax.f32 %v338_v23, 0.0  ;;  %v342_v36 = vadd.f32 %v1226_v5, %v303_v25  ;;  %v306_v40 = vmul.f32 %v1220_v3, %v267_v33  ;;  %v372_v44 = vmax.f32 %v340_v31, 0.0  ;;  %v277_v47 = vld [vmem:[%s1200_s27 + $0xa0] sm:$0xff]  ;;  %v280_v10 = vld [vmem:[%s1200_s27 + $0xb8] sm:$0xff] }
  0x1d   : > { %1086 = vmatprep.mubr.msk.f32.mxu0 %vm400_vm2, %v367_v22  ;;  %v371_v34 = vmax.f32 %v339_v24, 0.0  ;;  %v343_v45 = vadd.f32 %v1226_v5, %v304_v32  ;;  %v373_v48 = vmax.f32 %v341_v35, 0.0  ;;  %v307_v50 = vmul.f32 %v1220_v3, %v268_v38  ;;  %v281_v13 = vld [vmem:[%s1200_s27 + $0xc0] sm:$0xff]  ;;  %v272_v19 = vld [vmem:[%s1200_s27 + $0x78] sm:$0xff] }
  0x1e   : > { %1087 = vmatmul.mubr.msk.f32.vlgmr.msra.gmra.mrb[0].mxu0 %vm400_vm2, %v368_v27  ;;  %v374_v49 = vmax.f32 %v342_v36, 0.0  ;;  %v312_v51 = vmul.f32 %v1220_v3, %v273_v39  ;;  %v344_v53 = vadd.f32 %v1226_v5, %v305_v37  ;;  %v308_v54 = vmul.f32 %v1220_v3, %v269_v41  ;;  %v282_v27 = vld [vmem:[%s1200_s27 + $0xc8] sm:$0xff]  ;;  %v285_v41 = vld [vmem:[%s1200_s27 + $0xe0] sm:$0xff] }
  0x1f   : > { %1089 = vmatprep.mubr.msk.f32.mxu0 %vm400_vm2, %v369_v28  ;;  %v313_v55 = vmul.f32 %v1220_v3, %v274_v42  ;;  %v314_v56 = vmul.f32 %v1220_v3, %v275_v43  ;;  %v345_v58 = vadd.f32 %v1226_v5, %v306_v40  ;;  %v315_v60 = vmul.f32 %v1220_v3, %v276_v46  ;;  %v283_v28 = vld [vmem:[%s1200_s27 + $0xd0] sm:$0xff]  ;;  %v284_v40 = vld [vmem:[%s1200_s27 + $0xd8] sm:$0xff] }
  0x20   : > { %v351_v59 = vadd.f32 %v1226_v5, %v312_v51  ;;  %v316_v61 = vmul.f32 %v1220_v3, %v277_v47  ;;  %v375_v62 = vmax.f32 %v343_v45, 0.0  ;;  %v317_v4 = vmul.f32 %v1220_v3, %v278_v52  ;;  %v286_v51 = vld [vmem:[%s1200_s27 + $0xe8] sm:$0xff]  ;;  %v287_v52 = vld [vmem:[%s1200_s27 + $0xf0] sm:$0xff] }
  0x21   : > { %v352_v1 = vadd.f32 %v1226_v5, %v313_v55  ;;  %v353_v2 = vadd.f32 %v1226_v5, %v314_v56  ;;  %v354_v7 = vadd.f32 %v1226_v5, %v315_v60  ;;  %v318_v9 = vmul.f32 %v1220_v3, %v279_v57  ;;  %v288_v60 = vld [vmem:[%s1200_s27 + $0xf8] sm:$0xff] }
  0x22   : > { %1090 = vmatmul.mubr.msk.f32.gmra.mrb[2].mxu0 %vm400_vm2, %v370_v30  ;;  %v383_v6 = vmax.f32 %v351_v59, 0.0  ;;  %v355_v8 = vadd.f32 %v1226_v5, %v316_v61  ;;  %v346_v14 = vadd.f32 %v1226_v5, %v307_v50  ;;  %v347_v15 = vadd.f32 %v1226_v5, %v308_v54 }
  0x23   : > { %1092 = vmatprep.mubr.msk.f32.mxu0 %vm400_vm2, %v371_v34  ;;  %v384_v11 = vmax.f32 %v352_v1, 0.0  ;;  %v385_v12 = vmax.f32 %v353_v2, 0.0  ;;  %v309_v16 = vmul.f32 %v1220_v3, %v270_v63  ;;  %v310_v17 = vmul.f32 %v1220_v3, %v271_v0 }
  0x24   : > { %1110 = vmatprep.mubr.msk.f32.mxu1 %vm400_vm2, %v383_v6  ;;  %v376_v18 = vmax.f32 %v344_v53, 0.0  ;;  %v386_v20 = vmax.f32 %v354_v7, 0.0  ;;  %v356_v21 = vadd.f32 %v1226_v5, %v317_v4  ;;  %v319_v22 = vmul.f32 %v1220_v3, %v280_v10 }
  0x25   : > { %1111 = vmatmul.mubr.msk.f32.vlgmr.msra.gmra.mrb[0].mxu1 %vm400_vm2, %v384_v11  ;;  %v377_v23 = vmax.f32 %v345_v58, 0.0  ;;  %v387_v24 = vmax.f32 %v355_v8, 0.0  ;;  %v357_v25 = vadd.f32 %v1226_v5, %v318_v9  ;;  %v320_v26 = vmul.f32 %v1220_v3, %v281_v13 }
  0x26   : > { %1093 = vmatmul.mubr.msk.f32.gmra.mrb[4].mxu0 %vm400_vm2, %v372_v44  ;;  %1113 = vmatprep.mubr.msk.f32.mxu1 %vm400_vm2, %v385_v12  ;;  %v348_v29 = vadd.f32 %v1226_v5, %v309_v16  ;;  %v349_v30 = vadd.f32 %v1226_v5, %v310_v17  ;;  %v311_v31 = vmul.f32 %v1220_v3, %v272_v19  ;;  %v378_v32 = vmax.f32 %v346_v14, 0.0 }
  0x27   : > { %1095 = vmatprep.mubr.msk.f32.mxu0 %vm400_vm2, %v373_v48  ;;  %v388_v33 = vmax.f32 %v356_v21, 0.0  ;;  %v358_v34 = vadd.f32 %v1226_v5, %v319_v22  ;;  %v321_v35 = vmul.f32 %v1220_v3, %v282_v27  ;;  %v379_v36 = vmax.f32 %v347_v15, 0.0 }
  0x28   : > { %v389_v37 = vmax.f32 %v357_v25, 0.0  ;;  %v359_v38 = vadd.f32 %v1226_v5, %v320_v26  ;;  %v322_v39 = vmul.f32 %v1220_v3, %v283_v28  ;;  %v350_v42 = vadd.f32 %v1226_v5, %v311_v31 }
  0x29   : > { %1114 = vmatmul.mubr.msk.f32.gmra.mrb[2].mxu1 %vm400_vm2, %v386_v20  ;;  %v380_v43 = vmax.f32 %v348_v29, 0.0  ;;  %v390_v44 = vmax.f32 %v358_v34, 0.0  ;;  %v360_v45 = vadd.f32 %v1226_v5, %v321_v35  ;;  %v323_v46 = vmul.f32 %v1220_v3, %v284_v40 }
  0x2a   : > { %1096 = vmatmul.mubr.msk.f32.gmra.mrb[6].mxu0 %vm400_vm2, %v374_v49  ;;  %1116 = vmatprep.mubr.msk.f32.mxu1 %vm400_vm2, %v387_v24  ;;  %v381_v47 = vmax.f32 %v349_v30, 0.0  ;;  %v391_v48 = vmax.f32 %v359_v38, 0.0  ;;  %v361_v49 = vadd.f32 %v1226_v5, %v322_v39  ;;  %v324_v50 = vmul.f32 %v1220_v3, %v285_v41 }
  0x2b   : > { %1098 = vmatprep.mubr.msk.f32.mxu0 %vm400_vm2, %v375_v62  ;;  %v382_v53 = vmax.f32 %v350_v42, 0.0  ;;  %v392_v54 = vmax.f32 %v360_v45, 0.0  ;;  %v362_v55 = vadd.f32 %v1226_v5, %v323_v46  ;;  %v325_v56 = vmul.f32 %v1220_v3, %v286_v51 }
  0x2c   : > { %v393_v57 = vmax.f32 %v361_v49, 0.0  ;;  %v363_v58 = vadd.f32 %v1226_v5, %v324_v50  ;;  %v326_v59 = vmul.f32 %v1220_v3, %v287_v52  ;;  %v327_v63 = vmul.f32 %v1220_v3, %v288_v60 }
  0x2d   : > { %1117 = vmatmul.mubr.msk.f32.gmra.mrb[4].mxu1 %vm400_vm2, %v388_v33  ;;  %v394_v61 = vmax.f32 %v362_v55, 0.0  ;;  %v364_v62 = vadd.f32 %v1226_v5, %v325_v56 }
  0x2e   : > { %1099 = vmatmul.mubr.msk.f32.gmra.mrb[8].mxu0 %vm400_vm2, %v376_v18  ;;  %1119 = vmatprep.mubr.msk.f32.mxu1 %vm400_vm2, %v389_v37  ;;  %v395_v0 = vmax.f32 %v363_v58, 0.0  ;;  %v365_v1 = vadd.f32 %v1226_v5, %v326_v59  ;;  %v366_v4 = vadd.f32 %v1226_v5, %v327_v63 }
  0x2f   : > { %1101 = vmatprep.mubr.msk.f32.mxu0 %vm400_vm2, %v377_v23  ;;  %v396_v2 = vmax.f32 %v364_v62, 0.0 }
  0x30   : > { %v397_v6 = vmax.f32 %v365_v1, 0.0  ;;  %v398_v7 = vmax.f32 %v366_v4, 0.0 }
  0x31   : > { %1120 = vmatmul.mubr.msk.f32.gmra.mrb[6].mxu1 %vm400_vm2, %v390_v44 }
  0x32   : > { %1102 = vmatmul.mubr.msk.f32.gmra.mrb[10].mxu0 %vm400_vm2, %v378_v32  ;;  %1122 = vmatprep.mubr.msk.f32.mxu1 %vm400_vm2, %v391_v48 }
  0x33   : > { %1104 = vmatprep.mubr.msk.f32.mxu0 %vm400_vm2, %v379_v36 }
  0x35   : > { %1123 = vmatmul.mubr.msk.f32.gmra.mrb[8].mxu1 %vm400_vm2, %v392_v54 }
  0x36   : > { %1105 = vmatmul.mubr.msk.f32.gmra.mrb[12].mxu0 %vm400_vm2, %v380_v43  ;;  %1125 = vmatprep.mubr.msk.f32.mxu1 %vm400_vm2, %v393_v57 }
  0x37   : > { %1107 = vmatprep.mubr.msk.f32.mxu0 %vm400_vm2, %v381_v47 }
  0x39   : > { %1126 = vmatmul.mubr.msk.f32.gmra.mrb[10].mxu1 %vm400_vm2, %v394_v61 }
  0x3a   : > { %1108 = vmatmul.mubr.msk.f32.gmra.mrb[14].mxu0 %vm400_vm2, %v382_v53  ;;  %1128 = vmatprep.mubr.msk.f32.mxu1 %vm400_vm2, %v395_v0 }
  0x3d   : > { %1129 = vmatmul.mubr.msk.f32.gmra.mrb[12].mxu1 %vm400_vm2, %v396_v2 }
  0x3e   : > { %1131 = vmatprep.mubr.msk.f32.mxu1 %vm400_vm2, %v397_v6 }
  0x41   : > { %1132 = vmatmul.mubr.msk.f32.gmra.mrb[14].mxu1 %vm400_vm2, %v398_v7 }
  0xf1   : > { %v1088_v3 = vpop.f32.mrb[0].mxu0 }
  0xf2   : > { %728 = vst.msk [vmem:[%s1205_s30 + $0x8] sm:$0xff] %vm726_vm3, %v1088_v3  ;;  %v761_v8 = vsel %vm726_vm3, %v1088_v3, 0.0  ;;  %v834_v9 = vmul.f32 %v1088_v3, %v1088_v3  ;;  %v567_v5 = vpop.f32.mrb[1].mxu0 }
  0xf3   : > { %727 = vst.msk [vmem:[%s1205_s30] sm:$0xff] %vm726_vm3, %v567_v5  ;;  %v760_v10 = vsel %vm726_vm3, %v567_v5, 0.0  ;;  %v833_v11 = vmul.f32 %v567_v5, %v567_v5 }
  0xf4   : > { %v866_v12 = vsel %vm726_vm3, %v834_v9, 0.0  ;;  %v762_v13 = vadd.f32 %v761_v8, %v760_v10 }
  0xf5   : > { %v865_v14 = vsel %vm726_vm3, %v833_v11, 0.0  ;;  %v1091_v15 = vpop.f32.mrb[2].mxu0 }
  0xf6   : > { %v867_v16 = vadd.f32 %v866_v12, %v865_v14  ;;  %730 = vst.msk [vmem:[%s1205_s30 + $0x18] sm:$0xff] %vm726_vm3, %v1091_v15  ;;  %v577_v17 = vpop.f32.mrb[3].mxu0  ;;  %v836_v18 = vmul.f32 %v1091_v15, %v1091_v15  ;;  %v765_v22 = vsel %vm726_vm3, %v1091_v15, 0.0 }
  0xf7   : > { %729 = vst.msk [vmem:[%s1205_s30 + $0x10] sm:$0xff] %vm726_vm3, %v577_v17  ;;  %v763_v19 = vsel %vm726_vm3, %v577_v17, 0.0  ;;  %v835_v20 = vmul.f32 %v577_v17, %v577_v17 }
  0xf8   : > { %v764_v21 = vadd.f32 %v763_v19, %v762_v13  ;;  %v870_v28 = vsel %vm726_vm3, %v836_v18, 0.0  ;;  %v1377_v37 = vpop.f32.mrb[0].mxu1 }
  0xf9   : > { %v868_v23 = vsel %vm726_vm3, %v835_v20, 0.0  ;;  %v1094_v24 = vpop.f32.mrb[4].mxu0  ;;  %744 = vst.msk [vmem:[%s1205_s30 + $0x88] sm:$0xff] %vm726_vm3, %v1377_v37  ;;  %v1384_v41 = vpop.f32.mrb[1].mxu1 }
  0xfa   : > { %v869_v25 = vadd.f32 %v868_v23, %v867_v16  ;;  %732 = vst.msk [vmem:[%s1205_s30 + $0x28] sm:$0xff] %vm726_vm3, %v1094_v24  ;;  %v587_v26 = vpop.f32.mrb[5].mxu0  ;;  %v766_v27 = vadd.f32 %v765_v22, %v764_v21  ;;  %v838_v29 = vmul.f32 %v1094_v24, %v1094_v24  ;;  %v769_v34 = vsel %vm726_vm3, %v1094_v24, 0.0  ;;  %743 = vst.msk [vmem:[%s1205_s30 + $0x80] sm:$0xff] %vm726_vm3, %v1384_v41 }
  0xfb   : > { %731 = vst.msk [vmem:[%s1205_s30 + $0x20] sm:$0xff] %vm726_vm3, %v587_v26  ;;  %v767_v30 = vsel %vm726_vm3, %v587_v26, 0.0  ;;  %v837_v31 = vmul.f32 %v587_v26, %v587_v26 }
  0xfc   : > { %v768_v32 = vadd.f32 %v767_v30, %v766_v27  ;;  %v871_v33 = vadd.f32 %v870_v28, %v869_v25  ;;  %v874_v42 = vsel %vm726_vm3, %v838_v29, 0.0  ;;  %v1395_v51 = vpop.f32.mrb[2].mxu1 }
  0xfd   : > { %v872_v35 = vsel %vm726_vm3, %v837_v31, 0.0  ;;  %v1097_v36 = vpop.f32.mrb[6].mxu0  ;;  %746 = vst.msk [vmem:[%s1205_s30 + $0x98] sm:$0xff] %vm726_vm3, %v1395_v51  ;;  %v1402_v55 = vpop.f32.mrb[3].mxu1 }
  0xfe   : > { %v873_v38 = vadd.f32 %v872_v35, %v871_v33  ;;  %734 = vst.msk [vmem:[%s1205_s30 + $0x38] sm:$0xff] %vm726_vm3, %v1097_v36  ;;  %v597_v39 = vpop.f32.mrb[7].mxu0  ;;  %v770_v40 = vadd.f32 %v769_v34, %v768_v32  ;;  %v840_v43 = vmul.f32 %v1097_v36, %v1097_v36  ;;  %v773_v48 = vsel %vm726_vm3, %v1097_v36, 0.0  ;;  %745 = vst.msk [vmem:[%s1205_s30 + $0x90] sm:$0xff] %vm726_vm3, %v1402_v55 }
  0xff   : > { %733 = vst.msk [vmem:[%s1205_s30 + $0x30] sm:$0xff] %vm726_vm3, %v597_v39  ;;  %v771_v44 = vsel %vm726_vm3, %v597_v39, 0.0  ;;  %v839_v45 = vmul.f32 %v597_v39, %v597_v39  ;;  %v849_v33 = vmul.f32 %v1384_v41, %v1384_v41 }
 0x100   : > { %v772_v46 = vadd.f32 %v771_v44, %v770_v40  ;;  %v875_v47 = vadd.f32 %v874_v42, %v873_v38  ;;  %v878_v56 = vsel %vm726_vm3, %v840_v43, 0.0  ;;  %v1413_v1 = vpop.f32.mrb[4].mxu1 }
 0x101   : > { %v876_v49 = vsel %vm726_vm3, %v839_v45, 0.0  ;;  %v1100_v50 = vpop.f32.mrb[8].mxu0  ;;  %748 = vst.msk [vmem:[%s1205_s30 + $0xa8] sm:$0xff] %vm726_vm3, %v1413_v1  ;;  %v1420_v7 = vpop.f32.mrb[5].mxu1  ;;  %v791_v45 = vsel %vm726_vm3, %v1384_v41, 0.0  ;;  %v851_v41 = vmul.f32 %v1402_v55, %v1402_v55 }
 0x102   : > { %v877_v52 = vadd.f32 %v876_v49, %v875_v47  ;;  %736 = vst.msk [vmem:[%s1205_s30 + $0x48] sm:$0xff] %vm726_vm3, %v1100_v50  ;;  %v607_v53 = vpop.f32.mrb[9].mxu0  ;;  %v774_v54 = vadd.f32 %v773_v48, %v772_v46  ;;  %v842_v57 = vmul.f32 %v1100_v50, %v1100_v50  ;;  %v777_v62 = vsel %vm726_vm3, %v1100_v50, 0.0  ;;  %747 = vst.msk [vmem:[%s1205_s30 + $0xa0] sm:$0xff] %vm726_vm3, %v1420_v7 }
 0x103   : > { %735 = vst.msk [vmem:[%s1205_s30 + $0x40] sm:$0xff] %vm726_vm3, %v607_v53  ;;  %v775_v58 = vsel %vm726_vm3, %v607_v53, 0.0  ;;  %v841_v59 = vmul.f32 %v607_v53, %v607_v53  ;;  %v896_v53 = vsel %vm726_vm3, %v849_v33, 0.0 }
 0x104   : > { %v776_v60 = vadd.f32 %v775_v58, %v774_v54  ;;  %v879_v61 = vadd.f32 %v878_v56, %v877_v52  ;;  %v882_v3 = vsel %vm726_vm3, %v842_v57, 0.0  ;;  %v1431_v15 = vpop.f32.mrb[6].mxu1  ;;  %v850_v52 = vmul.f32 %v1377_v37, %v1377_v37 }
 0x105   : > { %v880_v63 = vsel %vm726_vm3, %v841_v59, 0.0  ;;  %v1103_v0 = vpop.f32.mrb[10].mxu0  ;;  %750 = vst.msk [vmem:[%s1205_s30 + $0xb8] sm:$0xff] %vm726_vm3, %v1431_v15  ;;  %v1438_v19 = vpop.f32.mrb[7].mxu1  ;;  %v793_v57 = vsel %vm726_vm3, %v1377_v37, 0.0  ;;  %v795_v58 = vsel %vm726_vm3, %v1402_v55, 0.0  ;;  %v853_v37 = vmul.f32 %v1420_v7, %v1420_v7 }
 0x106   : > { %v881_v2 = vadd.f32 %v880_v63, %v879_v61  ;;  %738 = vst.msk [vmem:[%s1205_s30 + $0x58] sm:$0xff] %vm726_vm3, %v1103_v0  ;;  %v617_v4 = vpop.f32.mrb[11].mxu0  ;;  %v778_v6 = vadd.f32 %v777_v62, %v776_v60  ;;  %v844_v8 = vmul.f32 %v1103_v0, %v1103_v0  ;;  %v781_v12 = vsel %vm726_vm3, %v1103_v0, 0.0  ;;  %749 = vst.msk [vmem:[%s1205_s30 + $0xb0] sm:$0xff] %vm726_vm3, %v1438_v19 }
 0x107   : > { %737 = vst.msk [vmem:[%s1205_s30 + $0x50] sm:$0xff] %vm726_vm3, %v617_v4  ;;  %v779_v9 = vsel %vm726_vm3, %v617_v4, 0.0  ;;  %v843_v5 = vmul.f32 %v617_v4, %v617_v4  ;;  %v898_v63 = vsel %vm726_vm3, %v850_v52, 0.0  ;;  %v852_v0 = vmul.f32 %v1395_v51, %v1395_v51 }
 0x108   : > { %v780_v10 = vadd.f32 %v779_v9, %v778_v6  ;;  %v883_v11 = vadd.f32 %v882_v3, %v881_v2  ;;  %v886_v20 = vsel %vm726_vm3, %v844_v8, 0.0  ;;  %v1449_v29 = vpop.f32.mrb[8].mxu1  ;;  %v900_v2 = vsel %vm726_vm3, %v851_v41, 0.0 }
 0x109   : > { %v884_v13 = vsel %vm726_vm3, %v843_v5, 0.0  ;;  %v1106_v14 = vpop.f32.mrb[12].mxu0  ;;  %752 = vst.msk [vmem:[%s1205_s30 + $0xc8] sm:$0xff] %vm726_vm3, %v1449_v29  ;;  %v1458_v34 = vpop.f32.mrb[9].mxu1  ;;  %v797_v6 = vsel %vm726_vm3, %v1395_v51, 0.0  ;;  %v799_v3 = vsel %vm726_vm3, %v1420_v7, 0.0  ;;  %v855_v51 = vmul.f32 %v1438_v19, %v1438_v19 }
 0x10a   : > { %v885_v16 = vadd.f32 %v884_v13, %v883_v11  ;;  %740 = vst.msk [vmem:[%s1205_s30 + $0x68] sm:$0xff] %vm726_vm3, %v1106_v14  ;;  %v627_v17 = vpop.f32.mrb[13].mxu0  ;;  %v782_v18 = vadd.f32 %v781_v12, %v780_v10  ;;  %v846_v21 = vmul.f32 %v1106_v14, %v1106_v14  ;;  %v785_v26 = vsel %vm726_vm3, %v1106_v14, 0.0  ;;  %751 = vst.msk [vmem:[%s1205_s30 + $0xc0] sm:$0xff] %vm726_vm3, %v1458_v34 }
 0x10b   : > { %739 = vst.msk [vmem:[%s1205_s30 + $0x60] sm:$0xff] %vm726_vm3, %v627_v17  ;;  %v783_v22 = vsel %vm726_vm3, %v627_v17, 0.0  ;;  %v845_v23 = vmul.f32 %v627_v17, %v627_v17  ;;  %v902_v12 = vsel %vm726_vm3, %v852_v0, 0.0  ;;  %v854_v13 = vmul.f32 %v1413_v1, %v1413_v1 }
 0x10c   : > { %v784_v24 = vadd.f32 %v783_v22, %v782_v18  ;;  %v887_v25 = vadd.f32 %v886_v20, %v885_v16  ;;  %v890_v35 = vsel %vm726_vm3, %v846_v21, 0.0  ;;  %v1471_v46 = vpop.f32.mrb[10].mxu1  ;;  %v904_v14 = vsel %vm726_vm3, %v853_v37, 0.0 }
 0x10d   : > { %v888_v27 = vsel %vm726_vm3, %v845_v23, 0.0  ;;  %v1109_v28 = vpop.f32.mrb[14].mxu0  ;;  %754 = vst.msk [vmem:[%s1205_s30 + $0xd8] sm:$0xff] %vm726_vm3, %v1471_v46  ;;  %v697_v49 = vpop.f32.mrb[11].mxu1  ;;  %v801_v18 = vsel %vm726_vm3, %v1413_v1, 0.0  ;;  %v803_v20 = vsel %vm726_vm3, %v1438_v19, 0.0  ;;  %v858_v33 = vmul.f32 %v1449_v29, %v1449_v29 }
 0x10e   : > { %v889_v30 = vadd.f32 %v888_v27, %v887_v25  ;;  %742 = vst.msk [vmem:[%s1205_s30 + $0x78] sm:$0xff] %vm726_vm3, %v1109_v28  ;;  %v637_v31 = vpop.f32.mrb[15].mxu0  ;;  %v786_v32 = vadd.f32 %v785_v26, %v784_v24  ;;  %v848_v36 = vmul.f32 %v1109_v28, %v1109_v28  ;;  %v789_v43 = vsel %vm726_vm3, %v1109_v28, 0.0  ;;  %753 = vst.msk [vmem:[%s1205_s30 + $0xd0] sm:$0xff] %vm726_vm3, %v697_v49 }
 0x10f   : > { %741 = vst.msk [vmem:[%s1205_s30 + $0x70] sm:$0xff] %vm726_vm3, %v637_v31  ;;  %v787_v38 = vsel %vm726_vm3, %v637_v31, 0.0  ;;  %v847_v39 = vmul.f32 %v637_v31, %v637_v31  ;;  %v906_v23 = vsel %vm726_vm3, %v854_v13, 0.0  ;;  %v856_v24 = vmul.f32 %v1431_v15, %v1431_v15 }
 0x110   : > { %v788_v40 = vadd.f32 %v787_v38, %v786_v32  ;;  %v891_v42 = vadd.f32 %v890_v35, %v889_v30  ;;  %v894_v50 = vsel %vm726_vm3, %v848_v36, 0.0  ;;  %v1488_v59 = vpop.f32.mrb[12].mxu1  ;;  %v908_v25 = vsel %vm726_vm3, %v855_v51, 0.0 }
 0x111   : > { %v892_v44 = vsel %vm726_vm3, %v847_v39, 0.0  ;;  %756 = vst.msk [vmem:[%s1205_s30 + $0xe8] sm:$0xff] %vm726_vm3, %v1488_v59  ;;  %v707_v62 = vpop.f32.mrb[13].mxu1  ;;  %v857_v26 = vmul.f32 %v1458_v34, %v1458_v34  ;;  %v805_v1 = vsel %vm726_vm3, %v1431_v15, 0.0  ;;  %v807_v19 = vsel %vm726_vm3, %v1458_v34, 0.0 }
 0x112   : > { %v790_v47 = vadd.f32 %v789_v43, %v788_v40  ;;  %v893_v48 = vadd.f32 %v892_v44, %v891_v42  ;;  %755 = vst.msk [vmem:[%s1205_s30 + $0xe0] sm:$0xff] %vm726_vm3, %v707_v62  ;;  %v910_v32 = vsel %vm726_vm3, %v856_v24, 0.0  ;;  %v859_v36 = vmul.f32 %v697_v49, %v697_v49 }
 0x113   : > { %v912_v35 = vsel %vm726_vm3, %v857_v26, 0.0  ;;  %v809_v40 = vsel %vm726_vm3, %v1449_v29, 0.0  ;;  %v811_v15 = vsel %vm726_vm3, %v697_v49, 0.0  ;;  %v914_v34 = vsel %vm726_vm3, %v858_v33, 0.0 }
 0x114   : > { %v895_v54 = vadd.f32 %v894_v50, %v893_v48  ;;  %v792_v56 = vadd.f32 %v791_v45, %v790_v47  ;;  %v1133_v8 = vpop.f32.mrb[14].mxu1  ;;  %v860_v44 = vmul.f32 %v1471_v46, %v1471_v46  ;;  %v916_v45 = vsel %vm726_vm3, %v859_v36, 0.0 }
 0x115   : > { %758 = vst.msk [vmem:[%s1205_s30 + $0xf8] sm:$0xff] %vm726_vm3, %v1133_v8  ;;  %v864_v10 = vmul.f32 %v1133_v8, %v1133_v8  ;;  %v717_v11 = vpop.f32.mrb[15].mxu1  ;;  %v861_v47 = vmul.f32 %v707_v62, %v707_v62  ;;  %v813_v52 = vsel %vm726_vm3, %v1471_v46, 0.0 }
 0x116   : > { %v897_v60 = vadd.f32 %v896_v53, %v895_v54  ;;  %v794_v61 = vadd.f32 %v793_v57, %v792_v56  ;;  %757 = vst.msk [vmem:[%s1205_s30 + $0xf0] sm:$0xff] %vm726_vm3, %v717_v11  ;;  %v815_v53 = vsel %vm726_vm3, %v707_v62, 0.0  ;;  %v918_v49 = vsel %vm726_vm3, %v860_v44, 0.0 }
 0x117   : > { %v926_v17 = vsel %vm726_vm3, %v864_v10, 0.0  ;;  %v862_v54 = vmul.f32 %v1488_v59, %v1488_v59  ;;  %v920_v56 = vsel %vm726_vm3, %v861_v47, 0.0  ;;  %v863_v57 = vmul.f32 %v717_v11, %v717_v11 }
 0x118   : > { %v796_v55 = vadd.f32 %v795_v58, %v794_v61  ;;  %v899_v4 = vadd.f32 %v898_v63, %v897_v60  ;;  %v817_v61 = vsel %vm726_vm3, %v1488_v59, 0.0  ;;  %v819_v63 = vsel %vm726_vm3, %v717_v11, 0.0 }
 0x119   : > { %v922_v62 = vsel %vm726_vm3, %v862_v54, 0.0 }
 0x11a   : > { %v901_v9 = vadd.f32 %v900_v2, %v899_v4  ;;  %v798_v5 = vadd.f32 %v797_v6, %v796_v55  ;;  %v924_v2 = vsel %vm726_vm3, %v863_v57, 0.0  ;;  %v821_v4 = vsel %vm726_vm3, %v1133_v8, 0.0  ;;  %v832_v8 = vld [vmem:[%s1575_s6] sm:$0x1] }
 0x11c   : > { %v800_v7 = vadd.f32 %v799_v3, %v798_v5  ;;  %v903_v16 = vadd.f32 %v902_v12, %v901_v9 }
 0x11e   : > { %v905_v21 = vadd.f32 %v904_v14, %v903_v16  ;;  %v802_v22 = vadd.f32 %v801_v18, %v800_v7  ;;  %v759_v16 = vld [vmem:[%s1574_s5] sm:$0x1] }
 0x120   : > { %v804_v27 = vadd.f32 %v803_v20, %v802_v22  ;;  %v907_v28 = vadd.f32 %v906_v23, %v905_v21 }
 0x122   : > { %v909_v30 = vadd.f32 %v908_v25, %v907_v28  ;;  %v806_v31 = vadd.f32 %v805_v1, %v804_v27 }
 0x124   : > { %v808_v38 = vadd.f32 %v807_v19, %v806_v31  ;;  %v911_v39 = vadd.f32 %v910_v32, %v909_v30 }
 0x126   : > { %v913_v42 = vadd.f32 %v912_v35, %v911_v39  ;;  %v810_v43 = vadd.f32 %v809_v40, %v808_v38 }
 0x128   : > { %v812_v48 = vadd.f32 %v811_v15, %v810_v43  ;;  %v915_v50 = vadd.f32 %v914_v34, %v913_v42 }
 0x12a   : > { %v917_v29 = vadd.f32 %v916_v45, %v915_v50  ;;  %v814_v41 = vadd.f32 %v813_v52, %v812_v48 }
 0x12c   : > { %v816_v58 = vadd.f32 %v815_v53, %v814_v41  ;;  %v919_v60 = vadd.f32 %v918_v49, %v917_v29 }
 0x12e   : > { %v921_v46 = vadd.f32 %v920_v56, %v919_v60  ;;  %v818_v0 = vadd.f32 %v817_v61, %v816_v58 }
 0x130   : > { %v820_v37 = vadd.f32 %v819_v63, %v818_v0  ;;  %v923_v55 = vadd.f32 %v922_v62, %v921_v46 }
 0x132   : > { %v822_v6 = vadd.f32 %v821_v4, %v820_v37  ;;  %v925_v3 = vadd.f32 %v924_v2, %v923_v55 }
 0x134   : > { %v823_v9 = vrot.slane %v822_v6, 4  ;;  %v927_v5 = vadd.f32 %v926_v17, %v925_v3 }
 0x136   : > { %v824_v10 = vadd.f32 %v823_v9, %v822_v6  ;;  %v928_v12 = vrot.slane %v927_v5, 4 }
 0x138   : > { %v825_v13 = vrot.slane %v824_v10, 2  ;;  %v929_v59 = vadd.f32 %v928_v12, %v927_v5 }
 0x13a   : > { %v826_v14 = vadd.f32 %v825_v13, %v824_v10  ;;  %v930_v11 = vrot.slane %v929_v59, 2 }
 0x13c   : > { %v827_v51 = vrot.slane %v826_v14, 1  ;;  %v931_v7 = vadd.f32 %v930_v11, %v929_v59 }
 0x13e   : > { %v828_v18 = vadd.f32 %v827_v51, %v826_v14  ;;  %v932_v20 = vrot.slane %v931_v7, 1 }
 0x140   : > { %v829_v17 = vadd.f32 %v828_v18, %v759_v16  ;;  %v933_v21 = vadd.f32 %v932_v20, %v931_v7 }
 0x142   : > { %831 = vst.msk [vmem:[%s1574_s5] sm:$0x1] %vm830_vm4, %v829_v17  ;;  %v934_v22 = vadd.f32 %v933_v21, %v832_v8 }
 0x144   : > { %935 = vst.msk [vmem:[%s1575_s6] sm:$0x1] %vm830_vm4, %v934_v22 }
 0x145 PF: > { %s17_s21 = sadd.s32 1, %s1151_s21  }
 0x146   : > { %p14_p5 = scmp.ge.s32.totalorder %s17_s21, 10  }
 0x148   :  { %16 = sbr.rel (!%p14_p5) target bundleno = 1 (0x1), region = 86 }

</bundles_post_ra>
